<compile_context>
chip_gen: v7x
topology: tpu7x:2x2x1
jax: 0.10.0
libtpu: 0.0.40
codegen_flags: <defaults>
</compile_context>

<pallas_src>
import functools

import jax
import jax.numpy as jnp
from jax import lax
from jax.experimental import pallas as pl
from jax.experimental.pallas import tpu as pltpu


# ----------------------------- in-kernel helpers -----------------------------

def _layernorm(x, w, b, eps):
    x32 = x.astype(jnp.float32)
    mu = jnp.mean(x32, axis=-1, keepdims=True)
    var = jnp.mean((x32 - mu) ** 2, axis=-1, keepdims=True)
    return (x32 - mu) * lax.rsqrt(var + eps) * w + b


def _gelu_tanh(x):
    c = 0.7978845608028654  # sqrt(2/pi)
    return 0.5 * x * (1.0 + jnp.tanh(c * (x + 0.044715 * x * x * x)))


def _softmax_lastdim(s):
    m = jnp.max(s, axis=-1, keepdims=True)
    e = jnp.exp(s - m)
    return e * pl.reciprocal(jnp.sum(e, axis=-1, keepdims=True), approx=True)


# --------------------------------- fused kernel -------------------------------

def fused_decoder_kernel(enc_ref, ids_ref, mask_tok_ref,
                         pw_ref, pb_ref, plnw_ref, plnb_ref,
                         ln1w_ref, ln1b_ref, wqkv_ref, bqkv_ref, wo_ref, bo_ref,
                         ln2w_ref, ln2b_ref, w1_ref, b1_ref, w2_ref, b2_ref,
                         postw_ref, postb_ref, predw_ref, predb_ref,
                         out_ref, *, num_heads, eps):
    # One grid step == one batch element (grid axis marked "parallel").
    S_total = ids_ref.shape[1]
    D = pw_ref.shape[-1]
    L = wqkv_ref.shape[0]
    H = num_heads
    hd = D // H
    scale = float(hd) ** -0.5

    # ---- projector + projector_norm ----
    enc = enc_ref[0].astype(jnp.float32)                         # (S_keep, Pin)
    S_keep = enc.shape[0]
    proj = jnp.dot(enc, pw_ref[...], preferred_element_type=jnp.float32) + pb_ref[...]
    proj = _layernorm(proj, plnw_ref[...], plnb_ref[...], eps)   # (S_keep, D)

    # ---- un-shuffle (torch.gather over ids_restore) + mask-token blend ----
    # h[j] = proj[ids[j]]            if ids[j] <  S_keep
    #      = mask_token              if ids[j] >= S_keep
    # implemented as a (S_total x S_keep) one-hot matmul on the MXU plus a
    # masked add of the (broadcast) mask token -- no concat, smaller matmul.
    ids_col = ids_ref[0]                                          # (S_total, 1) int32
    src = jax.lax.broadcasted_iota(jnp.int32, (S_total, S_keep), 1)
    gmat = (jnp.broadcast_to(ids_col, (S_total, S_keep)) == src).astype(jnp.float32)
    is_masked = (ids_col >= S_keep).astype(jnp.float32)           # (S_total, 1)
    h = jnp.dot(gmat, proj, preferred_element_type=jnp.float32)   # (S_total, D)
    h = h + is_masked * mask_tok_ref[...].astype(jnp.float32)
    # NOTE: position_embedding exists in the torch module but is unused in forward.

    # ---- decoder layers (weights VMEM-resident, static unroll over L) ----
    for l in range(L):
        # -- self attention --
        x = _layernorm(h, ln1w_ref[l], ln1b_ref[l], eps)          # (S, D)
        # fused QKV, produced transposed (3D, S): heads become sublane slices
        qkv_t = lax.dot_general(wqkv_ref[l], x,
                                dimension_numbers=(((1,), (1,)), ((), ())),
                                preferred_element_type=jnp.float32) + bqkv_ref[l]
        q_t = qkv_t[0:D] * scale                                   # pre-scale q once
        k_t = qkv_t[D:2 * D]
        v_t = qkv_t[2 * D:3 * D]
        wo_l = wo_ref[l]                                           # (D, D)
        attn = jnp.zeros((S_total, D), jnp.float32)
        for hh in range(H):
            r0, r1 = hh * hd, (hh + 1) * hd
            qh_t, kh_t, vh_t = q_t[r0:r1], k_t[r0:r1], v_t[r0:r1]  # (hd, S) sublane slices
            s = lax.dot_general(qh_t, kh_t,
                                dimension_numbers=(((0,), (0,)), ((), ())),
                                preferred_element_type=jnp.float32)  # (S, S)
            p = _softmax_lastdim(s)
            o_h = lax.dot_general(p, vh_t,
                                  dimension_numbers=(((1,), (1,)), ((), ())),
                                  preferred_element_type=jnp.float32)  # (S, hd)
            # fold the lane concat into the output projection:
            #   attn @ Wo == sum_h  o_h @ Wo[h*hd:(h+1)*hd, :]
            attn = attn + jnp.dot(o_h, wo_l[r0:r1, :],
                                  preferred_element_type=jnp.float32)
        h = h + attn + bo_ref[l]

        # -- MLP --
        x = _layernorm(h, ln2w_ref[l], ln2b_ref[l], eps)
        x = jnp.dot(x, w1_ref[l], preferred_element_type=jnp.float32) + b1_ref[l]
        x = _gelu_tanh(x)
        x = jnp.dot(x, w2_ref[l], preferred_element_type=jnp.float32) + b2_ref[l]
        h = h + x

    # ---- post_layernorm + predictor ----
    x = _layernorm(h, postw_ref[...], postb_ref[...], eps)
    y = jnp.dot(x, predw_ref[...], preferred_element_type=jnp.float32) + predb_ref[...]
    out_ref[0] = y.astype(out_ref.dtype)


# ------------------------------ pallas wrapper ---------------------------------

def _const_spec(shape):
    nd = len(shape)
    return pl.BlockSpec(shape, lambda b, _nd=nd: (0,) * _nd)


def decoder_model_forward(encoded_tokens, mask, ids_restore, params, cfg):
    """JAX/Pallas equivalent of DecoderModel.forward — a single fused pallas_call."""
    del mask  # carried in the torch input tuple but unused by forward
    eps = cfg["layer_norm_eps"]
    H = cfg["num_attention_heads"]

    B, S_keep, Pin = encoded_tokens.shape
    S_total = ids_restore.shape[1]
    D = params["proj_w"].shape[1]
    P = params["pred_w"].shape[1]

    # ---- wrapper-side weight packing (layout plumbing, not compute) ----
    layers = params["layers"]
    stk = lambda key: jnp.stack([lp[key] for lp in layers], axis=0)
    ln1w, ln1b = stk("ln1_w"), stk("ln1_b")                       # (L, 1, D)
    ln2w, ln2b = stk("ln2_w"), stk("ln2_b")
    # fused + transposed QKV: (L, 3D, D) and (L, 3D, 1)
    wqkv_t = jnp.stack([jnp.concatenate([lp["wq"].T, lp["wk"].T, lp["wv"].T], axis=0)
                        for lp in layers], axis=0)
    bqkv_t = jnp.stack([jnp.concatenate([lp["bq"], lp["bk"], lp["bv"]], axis=1).T
                        for lp in layers], axis=0)
    wo, bo = stk("wo"), stk("bo")                                 # (L, D, D), (L, 1, D)
    w1, b1 = stk("w1"), stk("b1")                                 # (L, D, I), (L, 1, I)
    w2, b2 = stk("w2"), stk("b2")                                 # (L, I, D), (L, 1, D)

    ids3 = ids_restore.astype(jnp.int32).reshape(B, S_total, 1)
    mask_tok = params["mask_token"].reshape(1, D)

    args = (encoded_tokens, ids3, mask_tok,
            params["proj_w"], params["proj_b"],
            params["proj_ln_w"], params["proj_ln_b"],
            ln1w, ln1b, wqkv_t, bqkv_t, wo, bo,
            ln2w, ln2b, w1, b1, w2, b2,
            params["post_ln_w"], params["post_ln_b"],
            params["pred_w"], params["pred_b"])

    in_specs = [pl.BlockSpec((1, S_keep, Pin), lambda b: (b, 0, 0)),
                pl.BlockSpec((1, S_total, 1), lambda b: (b, 0, 0))]
    in_specs += [_const_spec(a.shape) for a in args[2:]]

    return pl.pallas_call(
        functools.partial(fused_decoder_kernel, num_heads=H, eps=eps),
        out_shape=jax.ShapeDtypeStruct((B, S_total, P), jnp.float32),
        grid=(B,),
        in_specs=in_specs,
        out_specs=pl.BlockSpec((1, S_total, P), lambda b: (b, 0, 0)),
        compiler_params=pltpu.CompilerParams(dimension_semantics=("parallel",)),
    )(*args)


# ------------------------------ pure-JAX reference ----------------------------

def _ref_ln(x, w, b, eps):
    mu = jnp.mean(x, axis=-1, keepdims=True)
    var = jnp.mean((x - mu) ** 2, axis=-1, keepdims=True)
    return (x - mu) / jnp.sqrt(var + eps) * w + b


def reference_forward(encoded_tokens, mask, ids_restore, params, cfg):
    del mask
    eps = cfg["layer_norm_eps"]
    H = cfg["num_attention_heads"]
    x = encoded_tokens @ params["proj_w"] + params["proj_b"]
    x = _ref_ln(x, params["proj_ln_w"], params["proj_ln_b"], eps)
    B, S_keep, D = x.shape
    S_total = ids_restore.shape[1]
    mt = jnp.broadcast_to(params["mask_token"], (B, S_total - S_keep, D))
    full = jnp.concatenate([x, mt], axis=1)
    idx = jnp.broadcast_to(ids_restore[..., None].astype(jnp.int32), (B, S_total, D))
    h = jnp.take_along_axis(full, idx, axis=1)
    hd = D // H
    scale = hd ** -0.5
    for p in params["layers"]:
        r = h
        x = _ref_ln(h, p["ln1_w"], p["ln1_b"], eps)
        q = (x @ p["wq"] + p["bq"]).reshape(B, S_total, H, hd).transpose(0, 2, 1, 3)
        k = (x @ p["wk"] + p["bk"]).reshape(B, S_total, H, hd).transpose(0, 2, 1, 3)
        v = (x @ p["wv"] + p["bv"]).reshape(B, S_total, H, hd).transpose(0, 2, 1, 3)
        s = jnp.einsum("bhqd,bhkd->bhqk", q, k) * scale
        pw = jax.nn.softmax(s, axis=-1)
        a = jnp.einsum("bhqk,bhkd->bhqd", pw, v).transpose(0, 2, 1, 3).reshape(B, S_total, D)
        h = r + (a @ p["wo"] + p["bo"])
        r = h
        x = _ref_ln(h, p["ln2_w"], p["ln2_b"], eps)
        x = x @ p["w1"] + p["b1"]
        x = jax.nn.gelu(x, approximate=True)
        h = r + (x @ p["w2"] + p["b2"])
    h = _ref_ln(h, params["post_ln_w"], params["post_ln_b"], eps)
    return h @ params["pred_w"] + params["pred_b"]


# ----------------------------------- main --------------------------------------

def init_params(key, cfg):
    D = cfg["hidden_size"]
    I = cfg["intermediate_size"]
    Pin = cfg["in_proj_dim"]
    Pout = cfg["patch_size"] ** 2 * cfg["num_channels"]

    def lin(k, fan_in, fan_out):
        kw, kb = jax.random.split(k)
        w = jax.random.normal(kw, (fan_in, fan_out), jnp.float32) * 0.02
        b = jax.random.normal(kb, (1, fan_out), jnp.float32) * 0.02
        return w, b

    keys = jax.random.split(key, 4 + cfg["num_hidden_layers"])
    proj_w, proj_b = lin(keys[0], Pin, D)
    pred_w, pred_b = lin(keys[1], D, Pout)
    params = {
        "proj_w": proj_w, "proj_b": proj_b,
        "proj_ln_w": jnp.ones((1, D), jnp.float32), "proj_ln_b": jnp.zeros((1, D), jnp.float32),
        "mask_token": jnp.zeros((1, 1, D), jnp.float32),
        "post_ln_w": jnp.ones((1, D), jnp.float32), "post_ln_b": jnp.zeros((1, D), jnp.float32),
        "pred_w": pred_w, "pred_b": pred_b,
        "layers": [],
    }
    for li in range(cfg["num_hidden_layers"]):
        lk = jax.random.split(keys[4 + li], 6)
        wq, bq = lin(lk[0], D, D)
        wk, bk = lin(lk[1], D, D)
        wv, bv = lin(lk[2], D, D)
        wo, bo = lin(lk[3], D, D)
        w1, b1 = lin(lk[4], D, I)
        w2, b2 = lin(lk[5], I, D)
        params["layers"].append({
            "ln1_w": jnp.ones((1, D), jnp.float32), "ln1_b": jnp.zeros((1, D), jnp.float32),
            "wq": wq, "bq": bq, "wk": wk, "bk": bk, "wv": wv, "bv": bv,
            "wo": wo, "bo": bo,
            "ln2_w": jnp.ones((1, D), jnp.float32), "ln2_b": jnp.zeros((1, D), jnp.float32),
            "w1": w1, "b1": b1, "w2": w2, "b2": b2,
        })
    return params


if __name__ == "__main__":
    cfg = dict(
        image_size=16, in_proj_dim=24, hidden_size=32, intermediate_size=64,
        num_hidden_layers=2, num_attention_heads=4, num_channels=3,
        patch_size=4, layer_norm_eps=1e-6,
    )
    B = 2
    S_total = (cfg["image_size"] // cfg["patch_size"]) ** 2   # 16
    S_keep = S_total // 2                                     # 8 visible tokens

    key = jax.random.PRNGKey(0)
    k_param, k_x, k_perm = jax.random.split(key, 3)
    params = init_params(k_param, cfg)

    encoded_tokens = jax.random.normal(k_x, (B, S_keep, cfg["in_proj_dim"]), jnp.float32)
    ids_restore = jnp.stack([
        jax.random.permutation(jax.random.fold_in(k_perm, i), S_total) for i in range(B)
    ]).astype(jnp.int32)
    mask = (ids_restore >= S_keep).astype(jnp.float32)   # binary mask (unused in forward)

    out = decoder_model_forward(encoded_tokens, mask, ids_restore, params, cfg)
    out = jax.block_until_ready(out)

    ref = reference_forward(encoded_tokens, mask, ids_restore, params, cfg)
    assert out.shape == (B, S_total, cfg["patch_size"] ** 2 * cfg["num_channels"])
    assert jnp.allclose(out, ref, rtol=2e-3, atol=2e-3), "mismatch vs pure-JAX reference"

    print("KERNEL_OK")
</pallas_src>

<mosaic_0001>
module attributes {stable_mosaic.version = 11 : i64} {
  func.func @fused_decoder_kernel(%arg0: i32, %arg1: memref<1x8x24xf32, #tpu.memory_space<vmem>>, %arg2: memref<1x16x1xi32, #tpu.memory_space<vmem>>, %arg3: memref<1x32xf32, #tpu.memory_space<vmem>>, %arg4: memref<24x32xf32, #tpu.memory_space<vmem>>, %arg5: memref<1x32xf32, #tpu.memory_space<vmem>>, %arg6: memref<1x32xf32, #tpu.memory_space<vmem>>, %arg7: memref<1x32xf32, #tpu.memory_space<vmem>>, %arg8: memref<2x1x32xf32, #tpu.memory_space<vmem>>, %arg9: memref<2x1x32xf32, #tpu.memory_space<vmem>>, %arg10: memref<2x96x32xf32, #tpu.memory_space<vmem>>, %arg11: memref<2x96x1xf32, #tpu.memory_space<vmem>>, %arg12: memref<2x32x32xf32, #tpu.memory_space<vmem>>, %arg13: memref<2x1x32xf32, #tpu.memory_space<vmem>>, %arg14: memref<2x1x32xf32, #tpu.memory_space<vmem>>, %arg15: memref<2x1x32xf32, #tpu.memory_space<vmem>>, %arg16: memref<2x32x64xf32, #tpu.memory_space<vmem>>, %arg17: memref<2x1x64xf32, #tpu.memory_space<vmem>>, %arg18: memref<2x64x32xf32, #tpu.memory_space<vmem>>, %arg19: memref<2x1x32xf32, #tpu.memory_space<vmem>>, %arg20: memref<1x32xf32, #tpu.memory_space<vmem>>, %arg21: memref<1x32xf32, #tpu.memory_space<vmem>>, %arg22: memref<32x48xf32, #tpu.memory_space<vmem>>, %arg23: memref<1x48xf32, #tpu.memory_space<vmem>>, %arg24: memref<1x16x48xf32, #tpu.memory_space<vmem>>) attributes {dimension_semantics = [#tpu.dimension_semantics<parallel>], iteration_bounds = array<i64: 2>, scalar_prefetch = 0 : i64, scratch_operands = 0 : i64, tpu.core_type = #tpu.core_type<tc>, window_params = [{transform_indices = @transform_0, window_bounds = array<i64: 1, 8, 24>}, {transform_indices = @transform_1, window_bounds = array<i64: 1, 16, 1>}, {pipeline_mode = #tpu.pipeline_mode<synchronous>, transform_indices = @transform_2, window_bounds = array<i64: 1, 32>}, {pipeline_mode = #tpu.pipeline_mode<synchronous>, transform_indices = @transform_3, window_bounds = array<i64: 24, 32>}, {pipeline_mode = #tpu.pipeline_mode<synchronous>, transform_indices = @transform_4, window_bounds = array<i64: 1, 32>}, {pipeline_mode = #tpu.pipeline_mode<synchronous>, transform_indices = @transform_5, window_bounds = array<i64: 1, 32>}, {pipeline_mode = #tpu.pipeline_mode<synchronous>, transform_indices = @transform_6, window_bounds = array<i64: 1, 32>}, {pipeline_mode = #tpu.pipeline_mode<synchronous>, transform_indices = @transform_7, window_bounds = array<i64: 2, 1, 32>}, {pipeline_mode = #tpu.pipeline_mode<synchronous>, transform_indices = @transform_8, window_bounds = array<i64: 2, 1, 32>}, {pipeline_mode = #tpu.pipeline_mode<synchronous>, transform_indices = @transform_9, window_bounds = array<i64: 2, 96, 32>}, {pipeline_mode = #tpu.pipeline_mode<synchronous>, transform_indices = @transform_10, window_bounds = array<i64: 2, 96, 1>}, {pipeline_mode = #tpu.pipeline_mode<synchronous>, transform_indices = @transform_11, window_bounds = array<i64: 2, 32, 32>}, {pipeline_mode = #tpu.pipeline_mode<synchronous>, transform_indices = @transform_12, window_bounds = array<i64: 2, 1, 32>}, {pipeline_mode = #tpu.pipeline_mode<synchronous>, transform_indices = @transform_13, window_bounds = array<i64: 2, 1, 32>}, {pipeline_mode = #tpu.pipeline_mode<synchronous>, transform_indices = @transform_14, window_bounds = array<i64: 2, 1, 32>}, {pipeline_mode = #tpu.pipeline_mode<synchronous>, transform_indices = @transform_15, window_bounds = array<i64: 2, 32, 64>}, {pipeline_mode = #tpu.pipeline_mode<synchronous>, transform_indices = @transform_16, window_bounds = array<i64: 2, 1, 64>}, {pipeline_mode = #tpu.pipeline_mode<synchronous>, transform_indices = @transform_17, window_bounds = array<i64: 2, 64, 32>}, {pipeline_mode = #tpu.pipeline_mode<synchronous>, transform_indices = @transform_18, window_bounds = array<i64: 2, 1, 32>}, {pipeline_mode = #tpu.pipeline_mode<synchronous>, transform_indices = @transform_19, window_bounds = array<i64: 1, 32>}, {pipeline_mode = #tpu.pipeline_mode<synchronous>, transform_indices = @transform_20, window_bounds = array<i64: 1, 32>}, {pipeline_mode = #tpu.pipeline_mode<synchronous>, transform_indices = @transform_21, window_bounds = array<i64: 32, 48>}, {pipeline_mode = #tpu.pipeline_mode<synchronous>, transform_indices = @transform_22, window_bounds = array<i64: 1, 48>}, {transform_indices = @transform_23, window_bounds = array<i64: 1, 16, 48>}]} {
    %c0 = arith.constant 0 : index
    %c0_0 = arith.constant 0 : index
    %c0_1 = arith.constant 0 : index
    %0 = vector.load %arg1[%c0, %c0_0, %c0_1] : memref<1x8x24xf32, #tpu.memory_space<vmem>>, vector<1x8x24xf32>
    %1 = vector.shape_cast %0 : vector<1x8x24xf32> to vector<8x24xf32>
    %c0_2 = arith.constant 0 : index
    %c0_3 = arith.constant 0 : index
    %2 = vector.load %arg4[%c0_2, %c0_3] : memref<24x32xf32, #tpu.memory_space<vmem>>, vector<24x32xf32>
    %cst = arith.constant dense<0.000000e+00> : vector<8x32xf32>
    %3 = tpu.matmul %1, %2, %cst {dimension_numbers = #tpu.dot_dimension_numbers<[1], [0], [0], [1], [0, 0, 1, 1], [], []>} : vector<8x24xf32>, vector<24x32xf32>, vector<8x32xf32> -> vector<8x32xf32>
    %c0_4 = arith.constant 0 : index
    %c0_5 = arith.constant 0 : index
    %4 = vector.load %arg5[%c0_4, %c0_5] : memref<1x32xf32, #tpu.memory_space<vmem>>, vector<1x32xf32>
    %5 = vector.broadcast %4 : vector<1x32xf32> to vector<8x32xf32>
    %6 = arith.addf %3, %5 : vector<8x32xf32>
    %c0_6 = arith.constant 0 : index
    %c0_7 = arith.constant 0 : index
    %7 = vector.load %arg6[%c0_6, %c0_7] : memref<1x32xf32, #tpu.memory_space<vmem>>, vector<1x32xf32>
    %c0_8 = arith.constant 0 : index
    %c0_9 = arith.constant 0 : index
    %8 = vector.load %arg7[%c0_8, %c0_9] : memref<1x32xf32, #tpu.memory_space<vmem>>, vector<1x32xf32>
    %cst_10 = arith.constant dense<0.000000e+00> : vector<8xf32>
    %9 = vector.multi_reduction <add>, %6, %cst_10 [1] : vector<8x32xf32> to vector<8xf32>
    %10 = vector.shape_cast %9 : vector<8xf32> to vector<8x1xf32>
    %cst_11 = arith.constant 3.200000e+01 : f32
    %11 = vector.broadcast %cst_11 : f32 to vector<8x1xf32>
    %12 = arith.divf %10, %11 : vector<8x1xf32>
    %13 = vector.broadcast %12 : vector<8x1xf32> to vector<8x32xf32>
    %14 = arith.subf %6, %13 : vector<8x32xf32>
    %15 = arith.mulf %14, %14 : vector<8x32xf32>
    %cst_12 = arith.constant dense<0.000000e+00> : vector<8xf32>
    %16 = vector.multi_reduction <add>, %15, %cst_12 [1] : vector<8x32xf32> to vector<8xf32>
    %17 = vector.shape_cast %16 : vector<8xf32> to vector<8x1xf32>
    %cst_13 = arith.constant 3.200000e+01 : f32
    %18 = vector.broadcast %cst_13 : f32 to vector<8x1xf32>
    %19 = arith.divf %17, %18 : vector<8x1xf32>
    %20 = vector.broadcast %12 : vector<8x1xf32> to vector<8x32xf32>
    %21 = arith.subf %6, %20 : vector<8x32xf32>
    %cst_14 = arith.constant 9.99999997E-7 : f32
    %22 = vector.broadcast %cst_14 : f32 to vector<8x1xf32>
    %23 = arith.addf %19, %22 : vector<8x1xf32>
    %24 = math.rsqrt %23 : vector<8x1xf32>
    %25 = vector.broadcast %24 : vector<8x1xf32> to vector<8x32xf32>
    %26 = arith.mulf %21, %25 : vector<8x32xf32>
    %27 = vector.broadcast %7 : vector<1x32xf32> to vector<8x32xf32>
    %28 = arith.mulf %26, %27 : vector<8x32xf32>
    %29 = vector.broadcast %8 : vector<1x32xf32> to vector<8x32xf32>
    %30 = arith.addf %28, %29 : vector<8x32xf32>
    %c0_15 = arith.constant 0 : index
    %c0_16 = arith.constant 0 : index
    %c0_17 = arith.constant 0 : index
    %31 = vector.load %arg2[%c0_15, %c0_16, %c0_17] : memref<1x16x1xi32, #tpu.memory_space<vmem>>, vector<1x16x1xi32>
    %32 = vector.shape_cast %31 : vector<1x16x1xi32> to vector<16x1xi32>
    %33 = tpu.iota {dimensions = array<i32: 1>} : vector<16x8xi32>
    %34 = vector.shape_cast %32 : vector<16x1xi32> to vector<16x1xi32>
    %35 = vector.broadcast %34 : vector<16x1xi32> to vector<16x8xi32>
    %36 = arith.cmpi eq, %35, %33 : vector<16x8xi32>
    %37 = arith.extui %36 : vector<16x8xi1> to vector<16x8xi32>
    %38 = arith.sitofp %37 : vector<16x8xi32> to vector<16x8xf32>
    %c8_i32 = arith.constant 8 : i32
    %39 = vector.broadcast %c8_i32 : i32 to vector<16x1xi32>
    %40 = arith.cmpi sge, %32, %39 : vector<16x1xi32>
    %41 = arith.extui %40 : vector<16x1xi1> to vector<16x1xi32>
    %42 = arith.sitofp %41 : vector<16x1xi32> to vector<16x1xf32>
    %cst_18 = arith.constant dense<0.000000e+00> : vector<16x32xf32>
    %43 = tpu.matmul %38, %30, %cst_18 {dimension_numbers = #tpu.dot_dimension_numbers<[1], [0], [0], [1], [0, 0, 1, 1], [], []>} : vector<16x8xf32>, vector<8x32xf32>, vector<16x32xf32> -> vector<16x32xf32>
    %c0_19 = arith.constant 0 : index
    %c0_20 = arith.constant 0 : index
    %44 = vector.load %arg3[%c0_19, %c0_20] : memref<1x32xf32, #tpu.memory_space<vmem>>, vector<1x32xf32>
    %45 = vector.broadcast %42 : vector<16x1xf32> to vector<16x32xf32>
    %46 = vector.broadcast %44 : vector<1x32xf32> to vector<16x32xf32>
    %47 = arith.mulf %45, %46 : vector<16x32xf32>
    %48 = arith.addf %43, %47 : vector<16x32xf32>
    %c0_21 = arith.constant 0 : index
    %c0_22 = arith.constant 0 : index
    %c0_23 = arith.constant 0 : index
    %49 = vector.load %arg8[%c0_21, %c0_22, %c0_23] : memref<2x1x32xf32, #tpu.memory_space<vmem>>, vector<1x1x32xf32>
    %50 = vector.shape_cast %49 : vector<1x1x32xf32> to vector<1x32xf32>
    %c0_24 = arith.constant 0 : index
    %c0_25 = arith.constant 0 : index
    %c0_26 = arith.constant 0 : index
    %51 = vector.load %arg9[%c0_24, %c0_25, %c0_26] : memref<2x1x32xf32, #tpu.memory_space<vmem>>, vector<1x1x32xf32>
    %52 = vector.shape_cast %51 : vector<1x1x32xf32> to vector<1x32xf32>
    %cst_27 = arith.constant dense<0.000000e+00> : vector<16xf32>
    %53 = vector.multi_reduction <add>, %48, %cst_27 [1] : vector<16x32xf32> to vector<16xf32>
    %54 = vector.shape_cast %53 : vector<16xf32> to vector<16x1xf32>
    %cst_28 = arith.constant 3.200000e+01 : f32
    %55 = vector.broadcast %cst_28 : f32 to vector<16x1xf32>
    %56 = arith.divf %54, %55 : vector<16x1xf32>
    %57 = vector.broadcast %56 : vector<16x1xf32> to vector<16x32xf32>
    %58 = arith.subf %48, %57 : vector<16x32xf32>
    %59 = arith.mulf %58, %58 : vector<16x32xf32>
    %cst_29 = arith.constant dense<0.000000e+00> : vector<16xf32>
    %60 = vector.multi_reduction <add>, %59, %cst_29 [1] : vector<16x32xf32> to vector<16xf32>
    %61 = vector.shape_cast %60 : vector<16xf32> to vector<16x1xf32>
    %cst_30 = arith.constant 3.200000e+01 : f32
    %62 = vector.broadcast %cst_30 : f32 to vector<16x1xf32>
    %63 = arith.divf %61, %62 : vector<16x1xf32>
    %64 = vector.broadcast %56 : vector<16x1xf32> to vector<16x32xf32>
    %65 = arith.subf %48, %64 : vector<16x32xf32>
    %cst_31 = arith.constant 9.99999997E-7 : f32
    %66 = vector.broadcast %cst_31 : f32 to vector<16x1xf32>
    %67 = arith.addf %63, %66 : vector<16x1xf32>
    %68 = math.rsqrt %67 : vector<16x1xf32>
    %69 = vector.broadcast %68 : vector<16x1xf32> to vector<16x32xf32>
    %70 = arith.mulf %65, %69 : vector<16x32xf32>
    %71 = vector.broadcast %50 : vector<1x32xf32> to vector<16x32xf32>
    %72 = arith.mulf %70, %71 : vector<16x32xf32>
    %73 = vector.broadcast %52 : vector<1x32xf32> to vector<16x32xf32>
    %74 = arith.addf %72, %73 : vector<16x32xf32>
    %c0_32 = arith.constant 0 : index
    %c0_33 = arith.constant 0 : index
    %c0_34 = arith.constant 0 : index
    %75 = vector.load %arg10[%c0_32, %c0_33, %c0_34] : memref<2x96x32xf32, #tpu.memory_space<vmem>>, vector<1x96x32xf32>
    %76 = vector.shape_cast %75 : vector<1x96x32xf32> to vector<96x32xf32>
    %cst_35 = arith.constant dense<0.000000e+00> : vector<96x16xf32>
    %77 = tpu.matmul %76, %74, %cst_35 {dimension_numbers = #tpu.dot_dimension_numbers<[1], [1], [0], [0], [0, 0, 1, 0], [], []>} : vector<96x32xf32>, vector<16x32xf32>, vector<96x16xf32> -> vector<96x16xf32>
    %c0_36 = arith.constant 0 : index
    %c0_37 = arith.constant 0 : index
    %c0_38 = arith.constant 0 : index
    %78 = vector.load %arg11[%c0_36, %c0_37, %c0_38] : memref<2x96x1xf32, #tpu.memory_space<vmem>>, vector<1x96x1xf32>
    %79 = vector.shape_cast %78 : vector<1x96x1xf32> to vector<96x1xf32>
    %80 = vector.broadcast %79 : vector<96x1xf32> to vector<96x16xf32>
    %81 = arith.addf %77, %80 : vector<96x16xf32>
    %82 = vector.extract_strided_slice %81 {offsets = [0, 0], sizes = [32, 16], strides = [1, 1]} : vector<96x16xf32> to vector<32x16xf32>
    %cst_39 = arith.constant 0.353553385 : f32
    %83 = vector.broadcast %cst_39 : f32 to vector<32x16xf32>
    %84 = arith.mulf %82, %83 : vector<32x16xf32>
    %85 = vector.extract_strided_slice %81 {offsets = [32, 0], sizes = [32, 16], strides = [1, 1]} : vector<96x16xf32> to vector<32x16xf32>
    %86 = vector.extract_strided_slice %81 {offsets = [64, 0], sizes = [32, 16], strides = [1, 1]} : vector<96x16xf32> to vector<32x16xf32>
    %c0_40 = arith.constant 0 : index
    %c0_41 = arith.constant 0 : index
    %c0_42 = arith.constant 0 : index
    %87 = vector.load %arg12[%c0_40, %c0_41, %c0_42] : memref<2x32x32xf32, #tpu.memory_space<vmem>>, vector<1x32x32xf32>
    %88 = vector.shape_cast %87 : vector<1x32x32xf32> to vector<32x32xf32>
    %cst_43 = arith.constant 0.000000e+00 : f32
    %89 = vector.broadcast %cst_43 : f32 to vector<16x32xf32>
    %90 = vector.extract_strided_slice %84 {offsets = [0, 0], sizes = [8, 16], strides = [1, 1]} : vector<32x16xf32> to vector<8x16xf32>
    %91 = vector.extract_strided_slice %85 {offsets = [0, 0], sizes = [8, 16], strides = [1, 1]} : vector<32x16xf32> to vector<8x16xf32>
    %92 = vector.extract_strided_slice %86 {offsets = [0, 0], sizes = [8, 16], strides = [1, 1]} : vector<32x16xf32> to vector<8x16xf32>
    %cst_44 = arith.constant dense<0.000000e+00> : vector<16x16xf32>
    %93 = tpu.matmul %90, %91, %cst_44 {dimension_numbers = #tpu.dot_dimension_numbers<[0], [0], [1], [1], [0, 1, 1, 1], [], []>} : vector<8x16xf32>, vector<8x16xf32>, vector<16x16xf32> -> vector<16x16xf32>
    %cst_45 = arith.constant dense<0xFF800000> : vector<16xf32>
    %94 = vector.multi_reduction <maximumf>, %93, %cst_45 [1] : vector<16x16xf32> to vector<16xf32>
    %95 = vector.shape_cast %94 : vector<16xf32> to vector<16x1xf32>
    %96 = vector.broadcast %95 : vector<16x1xf32> to vector<16x16xf32>
    %97 = arith.subf %93, %96 : vector<16x16xf32>
    %98 = math.exp %97 : vector<16x16xf32>
    %cst_46 = arith.constant dense<0.000000e+00> : vector<16xf32>
    %99 = vector.multi_reduction <add>, %98, %cst_46 [1] : vector<16x16xf32> to vector<16xf32>
    %100 = vector.shape_cast %99 : vector<16xf32> to vector<16x1xf32>
    %101 = tpu.reciprocal %100 {approx = true} : vector<16x1xf32> -> vector<16x1xf32>
    %102 = vector.broadcast %101 : vector<16x1xf32> to vector<16x16xf32>
    %103 = arith.mulf %98, %102 : vector<16x16xf32>
    %cst_47 = arith.constant dense<0.000000e+00> : vector<16x8xf32>
    %104 = tpu.matmul %103, %92, %cst_47 {dimension_numbers = #tpu.dot_dimension_numbers<[1], [1], [0], [0], [0, 0, 1, 0], [], []>} : vector<16x16xf32>, vector<8x16xf32>, vector<16x8xf32> -> vector<16x8xf32>
    %105 = vector.extract_strided_slice %88 {offsets = [0, 0], sizes = [8, 32], strides = [1, 1]} : vector<32x32xf32> to vector<8x32xf32>
    %cst_48 = arith.constant dense<0.000000e+00> : vector<16x32xf32>
    %106 = tpu.matmul %104, %105, %cst_48 {dimension_numbers = #tpu.dot_dimension_numbers<[1], [0], [0], [1], [0, 0, 1, 1], [], []>} : vector<16x8xf32>, vector<8x32xf32>, vector<16x32xf32> -> vector<16x32xf32>
    %107 = arith.addf %89, %106 : vector<16x32xf32>
    %108 = vector.extract_strided_slice %84 {offsets = [8, 0], sizes = [8, 16], strides = [1, 1]} : vector<32x16xf32> to vector<8x16xf32>
    %109 = vector.extract_strided_slice %85 {offsets = [8, 0], sizes = [8, 16], strides = [1, 1]} : vector<32x16xf32> to vector<8x16xf32>
    %110 = vector.extract_strided_slice %86 {offsets = [8, 0], sizes = [8, 16], strides = [1, 1]} : vector<32x16xf32> to vector<8x16xf32>
    %cst_49 = arith.constant dense<0.000000e+00> : vector<16x16xf32>
    %111 = tpu.matmul %108, %109, %cst_49 {dimension_numbers = #tpu.dot_dimension_numbers<[0], [0], [1], [1], [0, 1, 1, 1], [], []>} : vector<8x16xf32>, vector<8x16xf32>, vector<16x16xf32> -> vector<16x16xf32>
    %cst_50 = arith.constant dense<0xFF800000> : vector<16xf32>
    %112 = vector.multi_reduction <maximumf>, %111, %cst_50 [1] : vector<16x16xf32> to vector<16xf32>
    %113 = vector.shape_cast %112 : vector<16xf32> to vector<16x1xf32>
    %114 = vector.broadcast %113 : vector<16x1xf32> to vector<16x16xf32>
    %115 = arith.subf %111, %114 : vector<16x16xf32>
    %116 = math.exp %115 : vector<16x16xf32>
    %cst_51 = arith.constant dense<0.000000e+00> : vector<16xf32>
    %117 = vector.multi_reduction <add>, %116, %cst_51 [1] : vector<16x16xf32> to vector<16xf32>
    %118 = vector.shape_cast %117 : vector<16xf32> to vector<16x1xf32>
    %119 = tpu.reciprocal %118 {approx = true} : vector<16x1xf32> -> vector<16x1xf32>
    %120 = vector.broadcast %119 : vector<16x1xf32> to vector<16x16xf32>
    %121 = arith.mulf %116, %120 : vector<16x16xf32>
    %cst_52 = arith.constant dense<0.000000e+00> : vector<16x8xf32>
    %122 = tpu.matmul %121, %110, %cst_52 {dimension_numbers = #tpu.dot_dimension_numbers<[1], [1], [0], [0], [0, 0, 1, 0], [], []>} : vector<16x16xf32>, vector<8x16xf32>, vector<16x8xf32> -> vector<16x8xf32>
    %123 = vector.extract_strided_slice %88 {offsets = [8, 0], sizes = [8, 32], strides = [1, 1]} : vector<32x32xf32> to vector<8x32xf32>
    %cst_53 = arith.constant dense<0.000000e+00> : vector<16x32xf32>
    %124 = tpu.matmul %122, %123, %cst_53 {dimension_numbers = #tpu.dot_dimension_numbers<[1], [0], [0], [1], [0, 0, 1, 1], [], []>} : vector<16x8xf32>, vector<8x32xf32>, vector<16x32xf32> -> vector<16x32xf32>
    %125 = arith.addf %107, %124 : vector<16x32xf32>
    %126 = vector.extract_strided_slice %84 {offsets = [16, 0], sizes = [8, 16], strides = [1, 1]} : vector<32x16xf32> to vector<8x16xf32>
    %127 = vector.extract_strided_slice %85 {offsets = [16, 0], sizes = [8, 16], strides = [1, 1]} : vector<32x16xf32> to vector<8x16xf32>
    %128 = vector.extract_strided_slice %86 {offsets = [16, 0], sizes = [8, 16], strides = [1, 1]} : vector<32x16xf32> to vector<8x16xf32>
    %cst_54 = arith.constant dense<0.000000e+00> : vector<16x16xf32>
    %129 = tpu.matmul %126, %127, %cst_54 {dimension_numbers = #tpu.dot_dimension_numbers<[0], [0], [1], [1], [0, 1, 1, 1], [], []>} : vector<8x16xf32>, vector<8x16xf32>, vector<16x16xf32> -> vector<16x16xf32>
    %cst_55 = arith.constant dense<0xFF800000> : vector<16xf32>
    %130 = vector.multi_reduction <maximumf>, %129, %cst_55 [1] : vector<16x16xf32> to vector<16xf32>
    %131 = vector.shape_cast %130 : vector<16xf32> to vector<16x1xf32>
    %132 = vector.broadcast %131 : vector<16x1xf32> to vector<16x16xf32>
    %133 = arith.subf %129, %132 : vector<16x16xf32>
    %134 = math.exp %133 : vector<16x16xf32>
    %cst_56 = arith.constant dense<0.000000e+00> : vector<16xf32>
    %135 = vector.multi_reduction <add>, %134, %cst_56 [1] : vector<16x16xf32> to vector<16xf32>
    %136 = vector.shape_cast %135 : vector<16xf32> to vector<16x1xf32>
    %137 = tpu.reciprocal %136 {approx = true} : vector<16x1xf32> -> vector<16x1xf32>
    %138 = vector.broadcast %137 : vector<16x1xf32> to vector<16x16xf32>
    %139 = arith.mulf %134, %138 : vector<16x16xf32>
    %cst_57 = arith.constant dense<0.000000e+00> : vector<16x8xf32>
    %140 = tpu.matmul %139, %128, %cst_57 {dimension_numbers = #tpu.dot_dimension_numbers<[1], [1], [0], [0], [0, 0, 1, 0], [], []>} : vector<16x16xf32>, vector<8x16xf32>, vector<16x8xf32> -> vector<16x8xf32>
    %141 = vector.extract_strided_slice %88 {offsets = [16, 0], sizes = [8, 32], strides = [1, 1]} : vector<32x32xf32> to vector<8x32xf32>
    %cst_58 = arith.constant dense<0.000000e+00> : vector<16x32xf32>
    %142 = tpu.matmul %140, %141, %cst_58 {dimension_numbers = #tpu.dot_dimension_numbers<[1], [0], [0], [1], [0, 0, 1, 1], [], []>} : vector<16x8xf32>, vector<8x32xf32>, vector<16x32xf32> -> vector<16x32xf32>
    %143 = arith.addf %125, %142 : vector<16x32xf32>
    %144 = vector.extract_strided_slice %84 {offsets = [24, 0], sizes = [8, 16], strides = [1, 1]} : vector<32x16xf32> to vector<8x16xf32>
    %145 = vector.extract_strided_slice %85 {offsets = [24, 0], sizes = [8, 16], strides = [1, 1]} : vector<32x16xf32> to vector<8x16xf32>
    %146 = vector.extract_strided_slice %86 {offsets = [24, 0], sizes = [8, 16], strides = [1, 1]} : vector<32x16xf32> to vector<8x16xf32>
    %cst_59 = arith.constant dense<0.000000e+00> : vector<16x16xf32>
    %147 = tpu.matmul %144, %145, %cst_59 {dimension_numbers = #tpu.dot_dimension_numbers<[0], [0], [1], [1], [0, 1, 1, 1], [], []>} : vector<8x16xf32>, vector<8x16xf32>, vector<16x16xf32> -> vector<16x16xf32>
    %cst_60 = arith.constant dense<0xFF800000> : vector<16xf32>
    %148 = vector.multi_reduction <maximumf>, %147, %cst_60 [1] : vector<16x16xf32> to vector<16xf32>
    %149 = vector.shape_cast %148 : vector<16xf32> to vector<16x1xf32>
    %150 = vector.broadcast %149 : vector<16x1xf32> to vector<16x16xf32>
    %151 = arith.subf %147, %150 : vector<16x16xf32>
    %152 = math.exp %151 : vector<16x16xf32>
    %cst_61 = arith.constant dense<0.000000e+00> : vector<16xf32>
    %153 = vector.multi_reduction <add>, %152, %cst_61 [1] : vector<16x16xf32> to vector<16xf32>
    %154 = vector.shape_cast %153 : vector<16xf32> to vector<16x1xf32>
    %155 = tpu.reciprocal %154 {approx = true} : vector<16x1xf32> -> vector<16x1xf32>
    %156 = vector.broadcast %155 : vector<16x1xf32> to vector<16x16xf32>
    %157 = arith.mulf %152, %156 : vector<16x16xf32>
    %cst_62 = arith.constant dense<0.000000e+00> : vector<16x8xf32>
    %158 = tpu.matmul %157, %146, %cst_62 {dimension_numbers = #tpu.dot_dimension_numbers<[1], [1], [0], [0], [0, 0, 1, 0], [], []>} : vector<16x16xf32>, vector<8x16xf32>, vector<16x8xf32> -> vector<16x8xf32>
    %159 = vector.extract_strided_slice %88 {offsets = [24, 0], sizes = [8, 32], strides = [1, 1]} : vector<32x32xf32> to vector<8x32xf32>
    %cst_63 = arith.constant dense<0.000000e+00> : vector<16x32xf32>
    %160 = tpu.matmul %158, %159, %cst_63 {dimension_numbers = #tpu.dot_dimension_numbers<[1], [0], [0], [1], [0, 0, 1, 1], [], []>} : vector<16x8xf32>, vector<8x32xf32>, vector<16x32xf32> -> vector<16x32xf32>
    %161 = arith.addf %143, %160 : vector<16x32xf32>
    %162 = arith.addf %48, %161 : vector<16x32xf32>
    %c0_64 = arith.constant 0 : index
    %c0_65 = arith.constant 0 : index
    %c0_66 = arith.constant 0 : index
    %163 = vector.load %arg13[%c0_64, %c0_65, %c0_66] : memref<2x1x32xf32, #tpu.memory_space<vmem>>, vector<1x1x32xf32>
    %164 = vector.shape_cast %163 : vector<1x1x32xf32> to vector<1x32xf32>
    %165 = vector.broadcast %164 : vector<1x32xf32> to vector<16x32xf32>
    %166 = arith.addf %162, %165 : vector<16x32xf32>
    %c0_67 = arith.constant 0 : index
    %c0_68 = arith.constant 0 : index
    %c0_69 = arith.constant 0 : index
    %167 = vector.load %arg14[%c0_67, %c0_68, %c0_69] : memref<2x1x32xf32, #tpu.memory_space<vmem>>, vector<1x1x32xf32>
    %168 = vector.shape_cast %167 : vector<1x1x32xf32> to vector<1x32xf32>
    %c0_70 = arith.constant 0 : index
    %c0_71 = arith.constant 0 : index
    %c0_72 = arith.constant 0 : index
    %169 = vector.load %arg15[%c0_70, %c0_71, %c0_72] : memref<2x1x32xf32, #tpu.memory_space<vmem>>, vector<1x1x32xf32>
    %170 = vector.shape_cast %169 : vector<1x1x32xf32> to vector<1x32xf32>
    %cst_73 = arith.constant dense<0.000000e+00> : vector<16xf32>
    %171 = vector.multi_reduction <add>, %166, %cst_73 [1] : vector<16x32xf32> to vector<16xf32>
    %172 = vector.shape_cast %171 : vector<16xf32> to vector<16x1xf32>
    %cst_74 = arith.constant 3.200000e+01 : f32
    %173 = vector.broadcast %cst_74 : f32 to vector<16x1xf32>
    %174 = arith.divf %172, %173 : vector<16x1xf32>
    %175 = vector.broadcast %174 : vector<16x1xf32> to vector<16x32xf32>
    %176 = arith.subf %166, %175 : vector<16x32xf32>
    %177 = arith.mulf %176, %176 : vector<16x32xf32>
    %cst_75 = arith.constant dense<0.000000e+00> : vector<16xf32>
    %178 = vector.multi_reduction <add>, %177, %cst_75 [1] : vector<16x32xf32> to vector<16xf32>
    %179 = vector.shape_cast %178 : vector<16xf32> to vector<16x1xf32>
    %cst_76 = arith.constant 3.200000e+01 : f32
    %180 = vector.broadcast %cst_76 : f32 to vector<16x1xf32>
    %181 = arith.divf %179, %180 : vector<16x1xf32>
    %182 = vector.broadcast %174 : vector<16x1xf32> to vector<16x32xf32>
    %183 = arith.subf %166, %182 : vector<16x32xf32>
    %cst_77 = arith.constant 9.99999997E-7 : f32
    %184 = vector.broadcast %cst_77 : f32 to vector<16x1xf32>
    %185 = arith.addf %181, %184 : vector<16x1xf32>
    %186 = math.rsqrt %185 : vector<16x1xf32>
    %187 = vector.broadcast %186 : vector<16x1xf32> to vector<16x32xf32>
    %188 = arith.mulf %183, %187 : vector<16x32xf32>
    %189 = vector.broadcast %168 : vector<1x32xf32> to vector<16x32xf32>
    %190 = arith.mulf %188, %189 : vector<16x32xf32>
    %191 = vector.broadcast %170 : vector<1x32xf32> to vector<16x32xf32>
    %192 = arith.addf %190, %191 : vector<16x32xf32>
    %c0_78 = arith.constant 0 : index
    %c0_79 = arith.constant 0 : index
    %c0_80 = arith.constant 0 : index
    %193 = vector.load %arg16[%c0_78, %c0_79, %c0_80] : memref<2x32x64xf32, #tpu.memory_space<vmem>>, vector<1x32x64xf32>
    %194 = vector.shape_cast %193 : vector<1x32x64xf32> to vector<32x64xf32>
    %cst_81 = arith.constant dense<0.000000e+00> : vector<16x64xf32>
    %195 = tpu.matmul %192, %194, %cst_81 {dimension_numbers = #tpu.dot_dimension_numbers<[1], [0], [0], [1], [0, 0, 1, 1], [], []>} : vector<16x32xf32>, vector<32x64xf32>, vector<16x64xf32> -> vector<16x64xf32>
    %c0_82 = arith.constant 0 : index
    %c0_83 = arith.constant 0 : index
    %c0_84 = arith.constant 0 : index
    %196 = vector.load %arg17[%c0_82, %c0_83, %c0_84] : memref<2x1x64xf32, #tpu.memory_space<vmem>>, vector<1x1x64xf32>
    %197 = vector.shape_cast %196 : vector<1x1x64xf32> to vector<1x64xf32>
    %198 = vector.broadcast %197 : vector<1x64xf32> to vector<16x64xf32>
    %199 = arith.addf %195, %198 : vector<16x64xf32>
    %cst_85 = arith.constant 5.000000e-01 : f32
    %200 = vector.broadcast %cst_85 : f32 to vector<16x64xf32>
    %201 = arith.mulf %200, %199 : vector<16x64xf32>
    %cst_86 = arith.constant 4.471500e-02 : f32
    %202 = vector.broadcast %cst_86 : f32 to vector<16x64xf32>
    %203 = arith.mulf %202, %199 : vector<16x64xf32>
    %204 = arith.mulf %203, %199 : vector<16x64xf32>
    %205 = arith.mulf %204, %199 : vector<16x64xf32>
    %206 = arith.addf %199, %205 : vector<16x64xf32>
    %cst_87 = arith.constant 0.797884583 : f32
    %207 = vector.broadcast %cst_87 : f32 to vector<16x64xf32>
    %208 = arith.mulf %207, %206 : vector<16x64xf32>
    %209 = math.tanh %208 : vector<16x64xf32>
    %cst_88 = arith.constant 1.000000e+00 : f32
    %210 = vector.broadcast %cst_88 : f32 to vector<16x64xf32>
    %211 = arith.addf %210, %209 : vector<16x64xf32>
    %212 = arith.mulf %201, %211 : vector<16x64xf32>
    %c0_89 = arith.constant 0 : index
    %c0_90 = arith.constant 0 : index
    %c0_91 = arith.constant 0 : index
    %213 = vector.load %arg18[%c0_89, %c0_90, %c0_91] : memref<2x64x32xf32, #tpu.memory_space<vmem>>, vector<1x64x32xf32>
    %214 = vector.shape_cast %213 : vector<1x64x32xf32> to vector<64x32xf32>
    %cst_92 = arith.constant dense<0.000000e+00> : vector<16x32xf32>
    %215 = tpu.matmul %212, %214, %cst_92 {dimension_numbers = #tpu.dot_dimension_numbers<[1], [0], [0], [1], [0, 0, 1, 1], [], []>} : vector<16x64xf32>, vector<64x32xf32>, vector<16x32xf32> -> vector<16x32xf32>
    %c0_93 = arith.constant 0 : index
    %c0_94 = arith.constant 0 : index
    %c0_95 = arith.constant 0 : index
    %216 = vector.load %arg19[%c0_93, %c0_94, %c0_95] : memref<2x1x32xf32, #tpu.memory_space<vmem>>, vector<1x1x32xf32>
    %217 = vector.shape_cast %216 : vector<1x1x32xf32> to vector<1x32xf32>
    %218 = vector.broadcast %217 : vector<1x32xf32> to vector<16x32xf32>
    %219 = arith.addf %215, %218 : vector<16x32xf32>
    %220 = arith.addf %166, %219 : vector<16x32xf32>
    %c1 = arith.constant 1 : index
    %c0_96 = arith.constant 0 : index
    %c0_97 = arith.constant 0 : index
    %221 = vector.load %arg8[%c1, %c0_96, %c0_97] : memref<2x1x32xf32, #tpu.memory_space<vmem>>, vector<1x1x32xf32>
    %222 = vector.shape_cast %221 : vector<1x1x32xf32> to vector<1x32xf32>
    %c1_98 = arith.constant 1 : index
    %c0_99 = arith.constant 0 : index
    %c0_100 = arith.constant 0 : index
    %223 = vector.load %arg9[%c1_98, %c0_99, %c0_100] : memref<2x1x32xf32, #tpu.memory_space<vmem>>, vector<1x1x32xf32>
    %224 = vector.shape_cast %223 : vector<1x1x32xf32> to vector<1x32xf32>
    %cst_101 = arith.constant dense<0.000000e+00> : vector<16xf32>
    %225 = vector.multi_reduction <add>, %220, %cst_101 [1] : vector<16x32xf32> to vector<16xf32>
    %226 = vector.shape_cast %225 : vector<16xf32> to vector<16x1xf32>
    %cst_102 = arith.constant 3.200000e+01 : f32
    %227 = vector.broadcast %cst_102 : f32 to vector<16x1xf32>
    %228 = arith.divf %226, %227 : vector<16x1xf32>
    %229 = vector.broadcast %228 : vector<16x1xf32> to vector<16x32xf32>
    %230 = arith.subf %220, %229 : vector<16x32xf32>
    %231 = arith.mulf %230, %230 : vector<16x32xf32>
    %cst_103 = arith.constant dense<0.000000e+00> : vector<16xf32>
    %232 = vector.multi_reduction <add>, %231, %cst_103 [1] : vector<16x32xf32> to vector<16xf32>
    %233 = vector.shape_cast %232 : vector<16xf32> to vector<16x1xf32>
    %cst_104 = arith.constant 3.200000e+01 : f32
    %234 = vector.broadcast %cst_104 : f32 to vector<16x1xf32>
    %235 = arith.divf %233, %234 : vector<16x1xf32>
    %236 = vector.broadcast %228 : vector<16x1xf32> to vector<16x32xf32>
    %237 = arith.subf %220, %236 : vector<16x32xf32>
    %cst_105 = arith.constant 9.99999997E-7 : f32
    %238 = vector.broadcast %cst_105 : f32 to vector<16x1xf32>
    %239 = arith.addf %235, %238 : vector<16x1xf32>
    %240 = math.rsqrt %239 : vector<16x1xf32>
    %241 = vector.broadcast %240 : vector<16x1xf32> to vector<16x32xf32>
    %242 = arith.mulf %237, %241 : vector<16x32xf32>
    %243 = vector.broadcast %222 : vector<1x32xf32> to vector<16x32xf32>
    %244 = arith.mulf %242, %243 : vector<16x32xf32>
    %245 = vector.broadcast %224 : vector<1x32xf32> to vector<16x32xf32>
    %246 = arith.addf %244, %245 : vector<16x32xf32>
    %c1_106 = arith.constant 1 : index
    %c0_107 = arith.constant 0 : index
    %c0_108 = arith.constant 0 : index
    %247 = vector.load %arg10[%c1_106, %c0_107, %c0_108] : memref<2x96x32xf32, #tpu.memory_space<vmem>>, vector<1x96x32xf32>
    %248 = vector.shape_cast %247 : vector<1x96x32xf32> to vector<96x32xf32>
    %cst_109 = arith.constant dense<0.000000e+00> : vector<96x16xf32>
    %249 = tpu.matmul %248, %246, %cst_109 {dimension_numbers = #tpu.dot_dimension_numbers<[1], [1], [0], [0], [0, 0, 1, 0], [], []>} : vector<96x32xf32>, vector<16x32xf32>, vector<96x16xf32> -> vector<96x16xf32>
    %c1_110 = arith.constant 1 : index
    %c0_111 = arith.constant 0 : index
    %c0_112 = arith.constant 0 : index
    %250 = vector.load %arg11[%c1_110, %c0_111, %c0_112] : memref<2x96x1xf32, #tpu.memory_space<vmem>>, vector<1x96x1xf32>
    %251 = vector.shape_cast %250 : vector<1x96x1xf32> to vector<96x1xf32>
    %252 = vector.broadcast %251 : vector<96x1xf32> to vector<96x16xf32>
    %253 = arith.addf %249, %252 : vector<96x16xf32>
    %254 = vector.extract_strided_slice %253 {offsets = [0, 0], sizes = [32, 16], strides = [1, 1]} : vector<96x16xf32> to vector<32x16xf32>
    %cst_113 = arith.constant 0.353553385 : f32
    %255 = vector.broadcast %cst_113 : f32 to vector<32x16xf32>
    %256 = arith.mulf %254, %255 : vector<32x16xf32>
    %257 = vector.extract_strided_slice %253 {offsets = [32, 0], sizes = [32, 16], strides = [1, 1]} : vector<96x16xf32> to vector<32x16xf32>
    %258 = vector.extract_strided_slice %253 {offsets = [64, 0], sizes = [32, 16], strides = [1, 1]} : vector<96x16xf32> to vector<32x16xf32>
    %c1_114 = arith.constant 1 : index
    %c0_115 = arith.constant 0 : index
    %c0_116 = arith.constant 0 : index
    %259 = vector.load %arg12[%c1_114, %c0_115, %c0_116] : memref<2x32x32xf32, #tpu.memory_space<vmem>>, vector<1x32x32xf32>
    %260 = vector.shape_cast %259 : vector<1x32x32xf32> to vector<32x32xf32>
    %cst_117 = arith.constant 0.000000e+00 : f32
    %261 = vector.broadcast %cst_117 : f32 to vector<16x32xf32>
    %262 = vector.extract_strided_slice %256 {offsets = [0, 0], sizes = [8, 16], strides = [1, 1]} : vector<32x16xf32> to vector<8x16xf32>
    %263 = vector.extract_strided_slice %257 {offsets = [0, 0], sizes = [8, 16], strides = [1, 1]} : vector<32x16xf32> to vector<8x16xf32>
    %264 = vector.extract_strided_slice %258 {offsets = [0, 0], sizes = [8, 16], strides = [1, 1]} : vector<32x16xf32> to vector<8x16xf32>
    %cst_118 = arith.constant dense<0.000000e+00> : vector<16x16xf32>
    %265 = tpu.matmul %262, %263, %cst_118 {dimension_numbers = #tpu.dot_dimension_numbers<[0], [0], [1], [1], [0, 1, 1, 1], [], []>} : vector<8x16xf32>, vector<8x16xf32>, vector<16x16xf32> -> vector<16x16xf32>
    %cst_119 = arith.constant dense<0xFF800000> : vector<16xf32>
    %266 = vector.multi_reduction <maximumf>, %265, %cst_119 [1] : vector<16x16xf32> to vector<16xf32>
    %267 = vector.shape_cast %266 : vector<16xf32> to vector<16x1xf32>
    %268 = vector.broadcast %267 : vector<16x1xf32> to vector<16x16xf32>
    %269 = arith.subf %265, %268 : vector<16x16xf32>
    %270 = math.exp %269 : vector<16x16xf32>
    %cst_120 = arith.constant dense<0.000000e+00> : vector<16xf32>
    %271 = vector.multi_reduction <add>, %270, %cst_120 [1] : vector<16x16xf32> to vector<16xf32>
    %272 = vector.shape_cast %271 : vector<16xf32> to vector<16x1xf32>
    %273 = tpu.reciprocal %272 {approx = true} : vector<16x1xf32> -> vector<16x1xf32>
    %274 = vector.broadcast %273 : vector<16x1xf32> to vector<16x16xf32>
    %275 = arith.mulf %270, %274 : vector<16x16xf32>
    %cst_121 = arith.constant dense<0.000000e+00> : vector<16x8xf32>
    %276 = tpu.matmul %275, %264, %cst_121 {dimension_numbers = #tpu.dot_dimension_numbers<[1], [1], [0], [0], [0, 0, 1, 0], [], []>} : vector<16x16xf32>, vector<8x16xf32>, vector<16x8xf32> -> vector<16x8xf32>
    %277 = vector.extract_strided_slice %260 {offsets = [0, 0], sizes = [8, 32], strides = [1, 1]} : vector<32x32xf32> to vector<8x32xf32>
    %cst_122 = arith.constant dense<0.000000e+00> : vector<16x32xf32>
    %278 = tpu.matmul %276, %277, %cst_122 {dimension_numbers = #tpu.dot_dimension_numbers<[1], [0], [0], [1], [0, 0, 1, 1], [], []>} : vector<16x8xf32>, vector<8x32xf32>, vector<16x32xf32> -> vector<16x32xf32>
    %279 = arith.addf %261, %278 : vector<16x32xf32>
    %280 = vector.extract_strided_slice %256 {offsets = [8, 0], sizes = [8, 16], strides = [1, 1]} : vector<32x16xf32> to vector<8x16xf32>
    %281 = vector.extract_strided_slice %257 {offsets = [8, 0], sizes = [8, 16], strides = [1, 1]} : vector<32x16xf32> to vector<8x16xf32>
    %282 = vector.extract_strided_slice %258 {offsets = [8, 0], sizes = [8, 16], strides = [1, 1]} : vector<32x16xf32> to vector<8x16xf32>
    %cst_123 = arith.constant dense<0.000000e+00> : vector<16x16xf32>
    %283 = tpu.matmul %280, %281, %cst_123 {dimension_numbers = #tpu.dot_dimension_numbers<[0], [0], [1], [1], [0, 1, 1, 1], [], []>} : vector<8x16xf32>, vector<8x16xf32>, vector<16x16xf32> -> vector<16x16xf32>
    %cst_124 = arith.constant dense<0xFF800000> : vector<16xf32>
    %284 = vector.multi_reduction <maximumf>, %283, %cst_124 [1] : vector<16x16xf32> to vector<16xf32>
    %285 = vector.shape_cast %284 : vector<16xf32> to vector<16x1xf32>
    %286 = vector.broadcast %285 : vector<16x1xf32> to vector<16x16xf32>
    %287 = arith.subf %283, %286 : vector<16x16xf32>
    %288 = math.exp %287 : vector<16x16xf32>
    %cst_125 = arith.constant dense<0.000000e+00> : vector<16xf32>
    %289 = vector.multi_reduction <add>, %288, %cst_125 [1] : vector<16x16xf32> to vector<16xf32>
    %290 = vector.shape_cast %289 : vector<16xf32> to vector<16x1xf32>
    %291 = tpu.reciprocal %290 {approx = true} : vector<16x1xf32> -> vector<16x1xf32>
    %292 = vector.broadcast %291 : vector<16x1xf32> to vector<16x16xf32>
    %293 = arith.mulf %288, %292 : vector<16x16xf32>
    %cst_126 = arith.constant dense<0.000000e+00> : vector<16x8xf32>
    %294 = tpu.matmul %293, %282, %cst_126 {dimension_numbers = #tpu.dot_dimension_numbers<[1], [1], [0], [0], [0, 0, 1, 0], [], []>} : vector<16x16xf32>, vector<8x16xf32>, vector<16x8xf32> -> vector<16x8xf32>
    %295 = vector.extract_strided_slice %260 {offsets = [8, 0], sizes = [8, 32], strides = [1, 1]} : vector<32x32xf32> to vector<8x32xf32>
    %cst_127 = arith.constant dense<0.000000e+00> : vector<16x32xf32>
    %296 = tpu.matmul %294, %295, %cst_127 {dimension_numbers = #tpu.dot_dimension_numbers<[1], [0], [0], [1], [0, 0, 1, 1], [], []>} : vector<16x8xf32>, vector<8x32xf32>, vector<16x32xf32> -> vector<16x32xf32>
    %297 = arith.addf %279, %296 : vector<16x32xf32>
    %298 = vector.extract_strided_slice %256 {offsets = [16, 0], sizes = [8, 16], strides = [1, 1]} : vector<32x16xf32> to vector<8x16xf32>
    %299 = vector.extract_strided_slice %257 {offsets = [16, 0], sizes = [8, 16], strides = [1, 1]} : vector<32x16xf32> to vector<8x16xf32>
    %300 = vector.extract_strided_slice %258 {offsets = [16, 0], sizes = [8, 16], strides = [1, 1]} : vector<32x16xf32> to vector<8x16xf32>
    %cst_128 = arith.constant dense<0.000000e+00> : vector<16x16xf32>
    %301 = tpu.matmul %298, %299, %cst_128 {dimension_numbers = #tpu.dot_dimension_numbers<[0], [0], [1], [1], [0, 1, 1, 1], [], []>} : vector<8x16xf32>, vector<8x16xf32>, vector<16x16xf32> -> vector<16x16xf32>
    %cst_129 = arith.constant dense<0xFF800000> : vector<16xf32>
    %302 = vector.multi_reduction <maximumf>, %301, %cst_129 [1] : vector<16x16xf32> to vector<16xf32>
    %303 = vector.shape_cast %302 : vector<16xf32> to vector<16x1xf32>
    %304 = vector.broadcast %303 : vector<16x1xf32> to vector<16x16xf32>
    %305 = arith.subf %301, %304 : vector<16x16xf32>
    %306 = math.exp %305 : vector<16x16xf32>
    %cst_130 = arith.constant dense<0.000000e+00> : vector<16xf32>
    %307 = vector.multi_reduction <add>, %306, %cst_130 [1] : vector<16x16xf32> to vector<16xf32>
    %308 = vector.shape_cast %307 : vector<16xf32> to vector<16x1xf32>
    %309 = tpu.reciprocal %308 {approx = true} : vector<16x1xf32> -> vector<16x1xf32>
    %310 = vector.broadcast %309 : vector<16x1xf32> to vector<16x16xf32>
    %311 = arith.mulf %306, %310 : vector<16x16xf32>
    %cst_131 = arith.constant dense<0.000000e+00> : vector<16x8xf32>
    %312 = tpu.matmul %311, %300, %cst_131 {dimension_numbers = #tpu.dot_dimension_numbers<[1], [1], [0], [0], [0, 0, 1, 0], [], []>} : vector<16x16xf32>, vector<8x16xf32>, vector<16x8xf32> -> vector<16x8xf32>
    %313 = vector.extract_strided_slice %260 {offsets = [16, 0], sizes = [8, 32], strides = [1, 1]} : vector<32x32xf32> to vector<8x32xf32>
    %cst_132 = arith.constant dense<0.000000e+00> : vector<16x32xf32>
    %314 = tpu.matmul %312, %313, %cst_132 {dimension_numbers = #tpu.dot_dimension_numbers<[1], [0], [0], [1], [0, 0, 1, 1], [], []>} : vector<16x8xf32>, vector<8x32xf32>, vector<16x32xf32> -> vector<16x32xf32>
    %315 = arith.addf %297, %314 : vector<16x32xf32>
    %316 = vector.extract_strided_slice %256 {offsets = [24, 0], sizes = [8, 16], strides = [1, 1]} : vector<32x16xf32> to vector<8x16xf32>
    %317 = vector.extract_strided_slice %257 {offsets = [24, 0], sizes = [8, 16], strides = [1, 1]} : vector<32x16xf32> to vector<8x16xf32>
    %318 = vector.extract_strided_slice %258 {offsets = [24, 0], sizes = [8, 16], strides = [1, 1]} : vector<32x16xf32> to vector<8x16xf32>
    %cst_133 = arith.constant dense<0.000000e+00> : vector<16x16xf32>
    %319 = tpu.matmul %316, %317, %cst_133 {dimension_numbers = #tpu.dot_dimension_numbers<[0], [0], [1], [1], [0, 1, 1, 1], [], []>} : vector<8x16xf32>, vector<8x16xf32>, vector<16x16xf32> -> vector<16x16xf32>
    %cst_134 = arith.constant dense<0xFF800000> : vector<16xf32>
    %320 = vector.multi_reduction <maximumf>, %319, %cst_134 [1] : vector<16x16xf32> to vector<16xf32>
    %321 = vector.shape_cast %320 : vector<16xf32> to vector<16x1xf32>
    %322 = vector.broadcast %321 : vector<16x1xf32> to vector<16x16xf32>
    %323 = arith.subf %319, %322 : vector<16x16xf32>
    %324 = math.exp %323 : vector<16x16xf32>
    %cst_135 = arith.constant dense<0.000000e+00> : vector<16xf32>
    %325 = vector.multi_reduction <add>, %324, %cst_135 [1] : vector<16x16xf32> to vector<16xf32>
    %326 = vector.shape_cast %325 : vector<16xf32> to vector<16x1xf32>
    %327 = tpu.reciprocal %326 {approx = true} : vector<16x1xf32> -> vector<16x1xf32>
    %328 = vector.broadcast %327 : vector<16x1xf32> to vector<16x16xf32>
    %329 = arith.mulf %324, %328 : vector<16x16xf32>
    %cst_136 = arith.constant dense<0.000000e+00> : vector<16x8xf32>
    %330 = tpu.matmul %329, %318, %cst_136 {dimension_numbers = #tpu.dot_dimension_numbers<[1], [1], [0], [0], [0, 0, 1, 0], [], []>} : vector<16x16xf32>, vector<8x16xf32>, vector<16x8xf32> -> vector<16x8xf32>
    %331 = vector.extract_strided_slice %260 {offsets = [24, 0], sizes = [8, 32], strides = [1, 1]} : vector<32x32xf32> to vector<8x32xf32>
    %cst_137 = arith.constant dense<0.000000e+00> : vector<16x32xf32>
    %332 = tpu.matmul %330, %331, %cst_137 {dimension_numbers = #tpu.dot_dimension_numbers<[1], [0], [0], [1], [0, 0, 1, 1], [], []>} : vector<16x8xf32>, vector<8x32xf32>, vector<16x32xf32> -> vector<16x32xf32>
    %333 = arith.addf %315, %332 : vector<16x32xf32>
    %334 = arith.addf %220, %333 : vector<16x32xf32>
    %c1_138 = arith.constant 1 : index
    %c0_139 = arith.constant 0 : index
    %c0_140 = arith.constant 0 : index
    %335 = vector.load %arg13[%c1_138, %c0_139, %c0_140] : memref<2x1x32xf32, #tpu.memory_space<vmem>>, vector<1x1x32xf32>
    %336 = vector.shape_cast %335 : vector<1x1x32xf32> to vector<1x32xf32>
    %337 = vector.broadcast %336 : vector<1x32xf32> to vector<16x32xf32>
    %338 = arith.addf %334, %337 : vector<16x32xf32>
    %c1_141 = arith.constant 1 : index
    %c0_142 = arith.constant 0 : index
    %c0_143 = arith.constant 0 : index
    %339 = vector.load %arg14[%c1_141, %c0_142, %c0_143] : memref<2x1x32xf32, #tpu.memory_space<vmem>>, vector<1x1x32xf32>
    %340 = vector.shape_cast %339 : vector<1x1x32xf32> to vector<1x32xf32>
    %c1_144 = arith.constant 1 : index
    %c0_145 = arith.constant 0 : index
    %c0_146 = arith.constant 0 : index
    %341 = vector.load %arg15[%c1_144, %c0_145, %c0_146] : memref<2x1x32xf32, #tpu.memory_space<vmem>>, vector<1x1x32xf32>
    %342 = vector.shape_cast %341 : vector<1x1x32xf32> to vector<1x32xf32>
    %cst_147 = arith.constant dense<0.000000e+00> : vector<16xf32>
    %343 = vector.multi_reduction <add>, %338, %cst_147 [1] : vector<16x32xf32> to vector<16xf32>
    %344 = vector.shape_cast %343 : vector<16xf32> to vector<16x1xf32>
    %cst_148 = arith.constant 3.200000e+01 : f32
    %345 = vector.broadcast %cst_148 : f32 to vector<16x1xf32>
    %346 = arith.divf %344, %345 : vector<16x1xf32>
    %347 = vector.broadcast %346 : vector<16x1xf32> to vector<16x32xf32>
    %348 = arith.subf %338, %347 : vector<16x32xf32>
    %349 = arith.mulf %348, %348 : vector<16x32xf32>
    %cst_149 = arith.constant dense<0.000000e+00> : vector<16xf32>
    %350 = vector.multi_reduction <add>, %349, %cst_149 [1] : vector<16x32xf32> to vector<16xf32>
    %351 = vector.shape_cast %350 : vector<16xf32> to vector<16x1xf32>
    %cst_150 = arith.constant 3.200000e+01 : f32
    %352 = vector.broadcast %cst_150 : f32 to vector<16x1xf32>
    %353 = arith.divf %351, %352 : vector<16x1xf32>
    %354 = vector.broadcast %346 : vector<16x1xf32> to vector<16x32xf32>
    %355 = arith.subf %338, %354 : vector<16x32xf32>
    %cst_151 = arith.constant 9.99999997E-7 : f32
    %356 = vector.broadcast %cst_151 : f32 to vector<16x1xf32>
    %357 = arith.addf %353, %356 : vector<16x1xf32>
    %358 = math.rsqrt %357 : vector<16x1xf32>
    %359 = vector.broadcast %358 : vector<16x1xf32> to vector<16x32xf32>
    %360 = arith.mulf %355, %359 : vector<16x32xf32>
    %361 = vector.broadcast %340 : vector<1x32xf32> to vector<16x32xf32>
    %362 = arith.mulf %360, %361 : vector<16x32xf32>
    %363 = vector.broadcast %342 : vector<1x32xf32> to vector<16x32xf32>
    %364 = arith.addf %362, %363 : vector<16x32xf32>
    %c1_152 = arith.constant 1 : index
    %c0_153 = arith.constant 0 : index
    %c0_154 = arith.constant 0 : index
    %365 = vector.load %arg16[%c1_152, %c0_153, %c0_154] : memref<2x32x64xf32, #tpu.memory_space<vmem>>, vector<1x32x64xf32>
    %366 = vector.shape_cast %365 : vector<1x32x64xf32> to vector<32x64xf32>
    %cst_155 = arith.constant dense<0.000000e+00> : vector<16x64xf32>
    %367 = tpu.matmul %364, %366, %cst_155 {dimension_numbers = #tpu.dot_dimension_numbers<[1], [0], [0], [1], [0, 0, 1, 1], [], []>} : vector<16x32xf32>, vector<32x64xf32>, vector<16x64xf32> -> vector<16x64xf32>
    %c1_156 = arith.constant 1 : index
    %c0_157 = arith.constant 0 : index
    %c0_158 = arith.constant 0 : index
    %368 = vector.load %arg17[%c1_156, %c0_157, %c0_158] : memref<2x1x64xf32, #tpu.memory_space<vmem>>, vector<1x1x64xf32>
    %369 = vector.shape_cast %368 : vector<1x1x64xf32> to vector<1x64xf32>
    %370 = vector.broadcast %369 : vector<1x64xf32> to vector<16x64xf32>
    %371 = arith.addf %367, %370 : vector<16x64xf32>
    %cst_159 = arith.constant 5.000000e-01 : f32
    %372 = vector.broadcast %cst_159 : f32 to vector<16x64xf32>
    %373 = arith.mulf %372, %371 : vector<16x64xf32>
    %cst_160 = arith.constant 4.471500e-02 : f32
    %374 = vector.broadcast %cst_160 : f32 to vector<16x64xf32>
    %375 = arith.mulf %374, %371 : vector<16x64xf32>
    %376 = arith.mulf %375, %371 : vector<16x64xf32>
    %377 = arith.mulf %376, %371 : vector<16x64xf32>
    %378 = arith.addf %371, %377 : vector<16x64xf32>
    %cst_161 = arith.constant 0.797884583 : f32
    %379 = vector.broadcast %cst_161 : f32 to vector<16x64xf32>
    %380 = arith.mulf %379, %378 : vector<16x64xf32>
    %381 = math.tanh %380 : vector<16x64xf32>
    %cst_162 = arith.constant 1.000000e+00 : f32
    %382 = vector.broadcast %cst_162 : f32 to vector<16x64xf32>
    %383 = arith.addf %382, %381 : vector<16x64xf32>
    %384 = arith.mulf %373, %383 : vector<16x64xf32>
    %c1_163 = arith.constant 1 : index
    %c0_164 = arith.constant 0 : index
    %c0_165 = arith.constant 0 : index
    %385 = vector.load %arg18[%c1_163, %c0_164, %c0_165] : memref<2x64x32xf32, #tpu.memory_space<vmem>>, vector<1x64x32xf32>
    %386 = vector.shape_cast %385 : vector<1x64x32xf32> to vector<64x32xf32>
    %cst_166 = arith.constant dense<0.000000e+00> : vector<16x32xf32>
    %387 = tpu.matmul %384, %386, %cst_166 {dimension_numbers = #tpu.dot_dimension_numbers<[1], [0], [0], [1], [0, 0, 1, 1], [], []>} : vector<16x64xf32>, vector<64x32xf32>, vector<16x32xf32> -> vector<16x32xf32>
    %c1_167 = arith.constant 1 : index
    %c0_168 = arith.constant 0 : index
    %c0_169 = arith.constant 0 : index
    %388 = vector.load %arg19[%c1_167, %c0_168, %c0_169] : memref<2x1x32xf32, #tpu.memory_space<vmem>>, vector<1x1x32xf32>
    %389 = vector.shape_cast %388 : vector<1x1x32xf32> to vector<1x32xf32>
    %390 = vector.broadcast %389 : vector<1x32xf32> to vector<16x32xf32>
    %391 = arith.addf %387, %390 : vector<16x32xf32>
    %392 = arith.addf %338, %391 : vector<16x32xf32>
    %c0_170 = arith.constant 0 : index
    %c0_171 = arith.constant 0 : index
    %393 = vector.load %arg20[%c0_170, %c0_171] : memref<1x32xf32, #tpu.memory_space<vmem>>, vector<1x32xf32>
    %c0_172 = arith.constant 0 : index
    %c0_173 = arith.constant 0 : index
    %394 = vector.load %arg21[%c0_172, %c0_173] : memref<1x32xf32, #tpu.memory_space<vmem>>, vector<1x32xf32>
    %cst_174 = arith.constant dense<0.000000e+00> : vector<16xf32>
    %395 = vector.multi_reduction <add>, %392, %cst_174 [1] : vector<16x32xf32> to vector<16xf32>
    %396 = vector.shape_cast %395 : vector<16xf32> to vector<16x1xf32>
    %cst_175 = arith.constant 3.200000e+01 : f32
    %397 = vector.broadcast %cst_175 : f32 to vector<16x1xf32>
    %398 = arith.divf %396, %397 : vector<16x1xf32>
    %399 = vector.broadcast %398 : vector<16x1xf32> to vector<16x32xf32>
    %400 = arith.subf %392, %399 : vector<16x32xf32>
    %401 = arith.mulf %400, %400 : vector<16x32xf32>
    %cst_176 = arith.constant dense<0.000000e+00> : vector<16xf32>
    %402 = vector.multi_reduction <add>, %401, %cst_176 [1] : vector<16x32xf32> to vector<16xf32>
    %403 = vector.shape_cast %402 : vector<16xf32> to vector<16x1xf32>
    %cst_177 = arith.constant 3.200000e+01 : f32
    %404 = vector.broadcast %cst_177 : f32 to vector<16x1xf32>
    %405 = arith.divf %403, %404 : vector<16x1xf32>
    %406 = vector.broadcast %398 : vector<16x1xf32> to vector<16x32xf32>
    %407 = arith.subf %392, %406 : vector<16x32xf32>
    %cst_178 = arith.constant 9.99999997E-7 : f32
    %408 = vector.broadcast %cst_178 : f32 to vector<16x1xf32>
    %409 = arith.addf %405, %408 : vector<16x1xf32>
    %410 = math.rsqrt %409 : vector<16x1xf32>
    %411 = vector.broadcast %410 : vector<16x1xf32> to vector<16x32xf32>
    %412 = arith.mulf %407, %411 : vector<16x32xf32>
    %413 = vector.broadcast %393 : vector<1x32xf32> to vector<16x32xf32>
    %414 = arith.mulf %412, %413 : vector<16x32xf32>
    %415 = vector.broadcast %394 : vector<1x32xf32> to vector<16x32xf32>
    %416 = arith.addf %414, %415 : vector<16x32xf32>
    %c0_179 = arith.constant 0 : index
    %c0_180 = arith.constant 0 : index
    %417 = vector.load %arg22[%c0_179, %c0_180] : memref<32x48xf32, #tpu.memory_space<vmem>>, vector<32x48xf32>
    %cst_181 = arith.constant dense<0.000000e+00> : vector<16x48xf32>
    %418 = tpu.matmul %416, %417, %cst_181 {dimension_numbers = #tpu.dot_dimension_numbers<[1], [0], [0], [1], [0, 0, 1, 1], [], []>} : vector<16x32xf32>, vector<32x48xf32>, vector<16x48xf32> -> vector<16x48xf32>
    %c0_182 = arith.constant 0 : index
    %c0_183 = arith.constant 0 : index
    %419 = vector.load %arg23[%c0_182, %c0_183] : memref<1x48xf32, #tpu.memory_space<vmem>>, vector<1x48xf32>
    %420 = vector.broadcast %419 : vector<1x48xf32> to vector<16x48xf32>
    %421 = arith.addf %418, %420 : vector<16x48xf32>
    %c0_184 = arith.constant 0 : index
    %c0_185 = arith.constant 0 : index
    %c0_186 = arith.constant 0 : index
    %422 = vector.load %arg24[%c0_184, %c0_185, %c0_186] : memref<1x16x48xf32, #tpu.memory_space<vmem>>, vector<1x16x48xf32>
    %423 = vector.shape_cast %422 : vector<1x16x48xf32> to vector<16x48xf32>
    %424 = vector.shape_cast %421 : vector<16x48xf32> to vector<1x16x48xf32>
    tpu.vector_store %arg24[%c0_184, %c0_185, %c0_186], %424 {strides = array<i32>} : memref<1x16x48xf32, #tpu.memory_space<vmem>>, vector<1x16x48xf32>,
    return
  }
  func.func @transform_0(%arg0: i32) -> (i32, i32, i32) {
    %c0_i32 = arith.constant 0 : i32
    %c0_i32_0 = arith.constant 0 : i32
    %c0_i32_1 = arith.constant 0 : i32
    return %arg0, %c0_i32, %c0_i32_0 : i32, i32, i32
  }
  func.func @transform_1(%arg0: i32) -> (i32, i32, i32) {
    %c0_i32 = arith.constant 0 : i32
    %c0_i32_0 = arith.constant 0 : i32
    %c0_i32_1 = arith.constant 0 : i32
    return %arg0, %c0_i32, %c0_i32_0 : i32, i32, i32
  }
  func.func @transform_2(%arg0: i32) -> (i32, i32) {
    %c0_i32 = arith.constant 0 : i32
    %c0_i32_0 = arith.constant 0 : i32
    %c0_i32_1 = arith.constant 0 : i32
    return %c0_i32, %c0_i32_0 : i32, i32
  }
  func.func @transform_3(%arg0: i32) -> (i32, i32) {
    %c0_i32 = arith.constant 0 : i32
    %c0_i32_0 = arith.constant 0 : i32
    %c0_i32_1 = arith.constant 0 : i32
    return %c0_i32, %c0_i32_0 : i32, i32
  }
  func.func @transform_4(%arg0: i32) -> (i32, i32) {
    %c0_i32 = arith.constant 0 : i32
    %c0_i32_0 = arith.constant 0 : i32
    %c0_i32_1 = arith.constant 0 : i32
    return %c0_i32, %c0_i32_0 : i32, i32
  }
  func.func @transform_5(%arg0: i32) -> (i32, i32) {
    %c0_i32 = arith.constant 0 : i32
    %c0_i32_0 = arith.constant 0 : i32
    %c0_i32_1 = arith.constant 0 : i32
    return %c0_i32, %c0_i32_0 : i32, i32
  }
  func.func @transform_6(%arg0: i32) -> (i32, i32) {
    %c0_i32 = arith.constant 0 : i32
    %c0_i32_0 = arith.constant 0 : i32
    %c0_i32_1 = arith.constant 0 : i32
    return %c0_i32, %c0_i32_0 : i32, i32
  }
  func.func @transform_7(%arg0: i32) -> (i32, i32, i32) {
    %c0_i32 = arith.constant 0 : i32
    %c0_i32_0 = arith.constant 0 : i32
    %c0_i32_1 = arith.constant 0 : i32
    %c0_i32_2 = arith.constant 0 : i32
    return %c0_i32, %c0_i32_0, %c0_i32_1 : i32, i32, i32
  }
  func.func @transform_8(%arg0: i32) -> (i32, i32, i32) {
    %c0_i32 = arith.constant 0 : i32
    %c0_i32_0 = arith.constant 0 : i32
    %c0_i32_1 = arith.constant 0 : i32
    %c0_i32_2 = arith.constant 0 : i32
    return %c0_i32, %c0_i32_0, %c0_i32_1 : i32, i32, i32
  }
  func.func @transform_9(%arg0: i32) -> (i32, i32, i32) {
    %c0_i32 = arith.constant 0 : i32
    %c0_i32_0 = arith.constant 0 : i32
    %c0_i32_1 = arith.constant 0 : i32
    %c0_i32_2 = arith.constant 0 : i32
    return %c0_i32, %c0_i32_0, %c0_i32_1 : i32, i32, i32
  }
  func.func @transform_10(%arg0: i32) -> (i32, i32, i32) {
    %c0_i32 = arith.constant 0 : i32
    %c0_i32_0 = arith.constant 0 : i32
    %c0_i32_1 = arith.constant 0 : i32
    %c0_i32_2 = arith.constant 0 : i32
    return %c0_i32, %c0_i32_0, %c0_i32_1 : i32, i32, i32
  }
  func.func @transform_11(%arg0: i32) -> (i32, i32, i32) {
    %c0_i32 = arith.constant 0 : i32
    %c0_i32_0 = arith.constant 0 : i32
    %c0_i32_1 = arith.constant 0 : i32
    %c0_i32_2 = arith.constant 0 : i32
    return %c0_i32, %c0_i32_0, %c0_i32_1 : i32, i32, i32
  }
  func.func @transform_12(%arg0: i32) -> (i32, i32, i32) {
    %c0_i32 = arith.constant 0 : i32
    %c0_i32_0 = arith.constant 0 : i32
    %c0_i32_1 = arith.constant 0 : i32
    %c0_i32_2 = arith.constant 0 : i32
    return %c0_i32, %c0_i32_0, %c0_i32_1 : i32, i32, i32
  }
  func.func @transform_13(%arg0: i32) -> (i32, i32, i32) {
    %c0_i32 = arith.constant 0 : i32
    %c0_i32_0 = arith.constant 0 : i32
    %c0_i32_1 = arith.constant 0 : i32
    %c0_i32_2 = arith.constant 0 : i32
    return %c0_i32, %c0_i32_0, %c0_i32_1 : i32, i32, i32
  }
  func.func @transform_14(%arg0: i32) -> (i32, i32, i32) {
    %c0_i32 = arith.constant 0 : i32
    %c0_i32_0 = arith.constant 0 : i32
    %c0_i32_1 = arith.constant 0 : i32
    %c0_i32_2 = arith.constant 0 : i32
    return %c0_i32, %c0_i32_0, %c0_i32_1 : i32, i32, i32
  }
  func.func @transform_15(%arg0: i32) -> (i32, i32, i32) {
    %c0_i32 = arith.constant 0 : i32
    %c0_i32_0 = arith.constant 0 : i32
    %c0_i32_1 = arith.constant 0 : i32
    %c0_i32_2 = arith.constant 0 : i32
    return %c0_i32, %c0_i32_0, %c0_i32_1 : i32, i32, i32
  }
  func.func @transform_16(%arg0: i32) -> (i32, i32, i32) {
    %c0_i32 = arith.constant 0 : i32
    %c0_i32_0 = arith.constant 0 : i32
    %c0_i32_1 = arith.constant 0 : i32
    %c0_i32_2 = arith.constant 0 : i32
    return %c0_i32, %c0_i32_0, %c0_i32_1 : i32, i32, i32
  }
  func.func @transform_17(%arg0: i32) -> (i32, i32, i32) {
    %c0_i32 = arith.constant 0 : i32
    %c0_i32_0 = arith.constant 0 : i32
    %c0_i32_1 = arith.constant 0 : i32
    %c0_i32_2 = arith.constant 0 : i32
    return %c0_i32, %c0_i32_0, %c0_i32_1 : i32, i32, i32
  }
  func.func @transform_18(%arg0: i32) -> (i32, i32, i32) {
    %c0_i32 = arith.constant 0 : i32
    %c0_i32_0 = arith.constant 0 : i32
    %c0_i32_1 = arith.constant 0 : i32
    %c0_i32_2 = arith.constant 0 : i32
    return %c0_i32, %c0_i32_0, %c0_i32_1 : i32, i32, i32
  }
  func.func @transform_19(%arg0: i32) -> (i32, i32) {
    %c0_i32 = arith.constant 0 : i32
    %c0_i32_0 = arith.constant 0 : i32
    %c0_i32_1 = arith.constant 0 : i32
    return %c0_i32, %c0_i32_0 : i32, i32
  }
  func.func @transform_20(%arg0: i32) -> (i32, i32) {
    %c0_i32 = arith.constant 0 : i32
    %c0_i32_0 = arith.constant 0 : i32
    %c0_i32_1 = arith.constant 0 : i32
    return %c0_i32, %c0_i32_0 : i32, i32
  }
  func.func @transform_21(%arg0: i32) -> (i32, i32) {
    %c0_i32 = arith.constant 0 : i32
    %c0_i32_0 = arith.constant 0 : i32
    %c0_i32_1 = arith.constant 0 : i32
    return %c0_i32, %c0_i32_0 : i32, i32
  }
  func.func @transform_22(%arg0: i32) -> (i32, i32) {
    %c0_i32 = arith.constant 0 : i32
    %c0_i32_0 = arith.constant 0 : i32
    %c0_i32_1 = arith.constant 0 : i32
    return %c0_i32, %c0_i32_0 : i32, i32
  }
  func.func @transform_23(%arg0: i32) -> (i32, i32, i32) {
    %c0_i32 = arith.constant 0 : i32
    %c0_i32_0 = arith.constant 0 : i32
    %c0_i32_1 = arith.constant 0 : i32
    return %arg0, %c0_i32, %c0_i32_0 : i32, i32, i32
  }
}

</mosaic_0001>

<bundles_post_ra>
// kernel: tpu_custom_call.1
= control target key start
LH: loop header
LB: loop body
LE: loop exit
PB: predicated region body
PF: predicated region fallthrough
CT: control target
= control target key end

     0   :  { %s6424_s0 = inlined_call_operand.vmem [shape: f32[2,8,24], index: 0, kind: input, shape index: {}]   ;;  %s6425_s1 = inlined_call_operand.vmem [shape: s32[2,16,1], index: 1, kind: input, shape index: {}]   ;;  %s6426_s2 = inlined_call_operand.vmem [shape: f32[1,32], index: 2, kind: input, shape index: {}]   ;;  %s6427_s3 = inlined_call_operand.vmem [shape: f32[24,32], index: 3, kind: input, shape index: {}]   ;;  %s6428_s4 = inlined_call_operand.vmem [shape: f32[1,32], index: 4, kind: input, shape index: {}]   ;;  %s6429_s5 = inlined_call_operand.vmem [shape: f32[1,32], index: 5, kind: input, shape index: {}]   ;;  %s6430_s6 = inlined_call_operand.vmem [shape: f32[1,32], index: 6, kind: input, shape index: {}]   ;;  %s6431_s7 = inlined_call_operand.vmem [shape: f32[2,1,32], index: 7, kind: input, shape index: {}]   ;;  %s6432_s8 = inlined_call_operand.vmem [shape: f32[2,1,32], index: 8, kind: input, shape index: {}]   ;;  %s6433_s9 = inlined_call_operand.vmem [shape: f32[2,96,32], index: 9, kind: input, shape index: {}]   ;;  %s6434_s10 = inlined_call_operand.vmem [shape: f32[2,96,1], index: 10, kind: input, shape index: {}]   ;;  %s6435_s11 = inlined_call_operand.vmem [shape: f32[2,32,32], index: 11, kind: input, shape index: {}]   ;;  %s6436_s12 = inlined_call_operand.vmem [shape: f32[2,1,32], index: 12, kind: input, shape index: {}]   ;;  %s6437_s13 = inlined_call_operand.vmem [shape: f32[2,1,32], index: 13, kind: input, shape index: {}]   ;;  %s6438_s14 = inlined_call_operand.vmem [shape: f32[2,1,32], index: 14, kind: input, shape index: {}]   ;;  %s6439_s15 = inlined_call_operand.vmem [shape: f32[2,32,64], index: 15, kind: input, shape index: {}]   ;;  %s6440_s16 = inlined_call_operand.vmem [shape: f32[2,1,64], index: 16, kind: input, shape index: {}]   ;;  %s6441_s17 = inlined_call_operand.vmem [shape: f32[2,64,32], index: 17, kind: input, shape index: {}]   ;;  %s6442_s18 = inlined_call_operand.vmem [shape: f32[2,1,32], index: 18, kind: input, shape index: {}]   ;;  %s6443_s19 = inlined_call_operand.vmem [shape: f32[1,32], index: 19, kind: input, shape index: {}]   ;;  %s6444_s20 = inlined_call_operand.vmem [shape: f32[1,32], index: 20, kind: input, shape index: {}]   ;;  %s6445_s21 = inlined_call_operand.vmem [shape: f32[32,48], index: 21, kind: input, shape index: {}]   ;;  %s6446_s22 = inlined_call_operand.vmem [shape: f32[1,48], index: 22, kind: input, shape index: {}]   ;;  %s6447_s23 = inlined_call_operand.hbm [shape: f32[2,16,48], index: 23, kind: output, shape index: {}]  }
   0x1   :  { %6457 = sst [smem:[#allocation11_spill]] %s6424_s0 }
   0x2   :  { %6458 = sst [smem:[#allocation12_spill]] %s6425_s1 }
   0x3   :  { %6459 = sst [smem:[#allocation13_spill]] %s6426_s2 }
   0x4   :  { %6460 = sst [smem:[#allocation14_spill]] %s6427_s3 }
   0x5   :  { %6461 = sst [smem:[#allocation15_spill]] %s6428_s4 }
   0x6   :  { %6462 = sst [smem:[#allocation16_spill]] %s6429_s5 }
   0x7   :  { %6463 = sst [smem:[#allocation17_spill]] %s6430_s6 }
   0x8   :  { %6464 = sst [smem:[#allocation18_spill]] %s6431_s7 }
   0x9   :  { %6465 = sst [smem:[#allocation19_spill]] %s6432_s8 }
   0xa   :  { %28 = vsyncpa [#allocation3], 0 }
   0xb   :  { %30 = vsyncpa [#allocation3 + $0x1], 0  ;;  %s5744_s4 = smov 0   ;;  %s5746_s30 = smov 0  }
   0xc   :  { %s5748_s24 = smov 0   ;;  %s5750_s25 = smov 0  }
   0xd LB: > { %6466 = sst [smem:[#allocation5_spill]] %s5603_s4  ;;  %s5765_s5 = sadd.s32 4294967295, %s5615_s25   ;;  %s5615_s25 = sphi %s5750_s25, %s6489_s25   ;;  %s5611_s24 = sphi %s5748_s24, %s6494_s24   ;;  %s5607_s30 = sphi %s5746_s30, %s6493_s30   ;;  %s5603_s4 = sphi %s5744_s4, %s6492_s4  }
   0xe   : > { %6467 = sst [smem:[#allocation6_spill]] %s5611_s24  ;;  %s4746_s1 = sadd.s32 4294967294, %s5615_s25  }
   0xf   : > { %6468 = sst [smem:[#allocation7_spill]] %s5615_s25  ;;  %s5769_s26 = sadd.s32 1, %s5615_s25  }
  0x10   : > { %6469 = sst [smem:[#allocation8_spill]] %s5769_s26  ;;  %s536_s2 = sadd.s32 1, %s5611_s24 }
  0x11   : > { %s533_s6 = ssub.s32 %s5615_s25, %s5769_s26  ;;  %p546_p0 = scmp.ne.s32.totalorder %s5611_s24, %s5607_s30 }
  0x12   : > { %p534_p1 = scmp.eq.s32.totalorder %s533_s6, 0  ;;  %p547_p2 = scmp.eq.s32.totalorder %s5765_s5, 1 }
  0x13   : > { %p552_p3 = scmp.ne.s32.totalorder %s5607_s30, %s5603_s4  ;;  %p553_p4 = scmp.eq.s32.totalorder %s4746_s1, 1 }
  0x14   : > { %s5780_s27 = scalar_select %p534_p1, %s5611_s24, %s536_s2  }
  0x15   : > { %p5782_p5 = por %p547_p2, %p546_p0  ;;  %p5786_p6 = por %p553_p4, %p552_p3 }
  0x16   : > { %6470 = sst [smem:[#allocation9_spill]] %s5780_s27  ;;  %p4749_p7 = scmp.ge.s32.totalorder %s5615_s25, 1 }
  0x17   : > { %s6472_s28 = scalar_select %p5786_p6, 1, 0 }
  0x18   : > { %p649_p8 = scmp.lt.s32.totalorder %s5615_s25, 3 }
  0x19   : > { %6473 = sst [smem:[#allocation10_spill]] %s6472_s28 }
  0x1a   : > { %p650_p9 = pnand %p4749_p7, %p649_p8 }
  0x1b   : > { %s6474_s0 = sld [smem:[#allocation14_spill]] (!%p650_p9)  ;;  %v5617_v2 = vmov (!%p650_p9), 0.0|0.0   ;;  %vm5618_vm0 = vmmov (!%p650_p9), 0   ;;  %v5619_v4 = vmov (!%p650_p9), 0.0   ;;  %p717_p10 = scmp.lt.s32.totalorder (!%p650_p9), %s5765_s5, 1  ;;  %vm737_vm1 = vcmask (!%p650_p9), 195584  }
  0x1c   : > { %653 = sbr.rel (%p650_p9) target bundleno = 9699 (0x25e3), region = 112  ;;  %5324 = vmatprep.subr.bf16.mxu0 (!%p650_p9), %v5617_v2  ;;  %5081 = vmatprep.mubr.msk.f32.mxu0 (!%p650_p9), %vm5618_vm0, %v5619_v4  ;;  %s6475_s1 = sld [smem:[#allocation11_spill]] (!%p650_p9)  ;;  %vm813_vm2 = vcmask (!%p650_p9), 261120   ;;  %v5620_v12 = vmov (!%p650_p9), 0   ;;  %v844_v20 = vlaneseq (!%p650_p9)  ;;  %vm883_vm3 = vcmask (!%p650_p9), 64512   ;;  %v1021_v60 = vld [vmem:[%s6434_s10] sm:$0xff] (!%p650_p9) }
  0x1d   : > { %s6476_s25 = sld [smem:[#allocation15_spill]] (!%p650_p9)  ;;  %5452 = vset.pattern.permute.xlu1 (!%p650_p9), %v5620_v12  ;;  %5453 = vset.pattern.permute.xlu0 (!%p650_p9), %v5620_v12  ;;  %s6478_s28 = sld [smem:[#allocation16_spill]] (!%p650_p9)  ;;  %v1025_v61 = vld [vmem:[%s6434_s10 + $0x20] sm:$0xff] (!%p650_p9)  ;;  %vm5855_vm8 = vmpackc.low (!%p650_p9), %vm813_vm2, %vm813_vm2  ;;  %vm1381_vm9 = vcmask (!%p650_p9), 130048   ;;  %vm2653_vm10 = vcmask (!%p650_p9), 523264   ;;  %vm4655_vm11 = vcmask (!%p650_p9), 392192  }
  0x1e   : > { %v845_v21 = vand.u32 (!%p650_p9), 127, %v844_v20  ;;  %s6480_s26 = sld [smem:[#allocation13_spill]] (!%p650_p9)  ;;  %v1009_v62 = vld [vmem:[%s6433_s9] sm:$0xff] (!%p650_p9)  ;;  %s6483_s8 = sld [smem:[#allocation19_spill]] (!%p650_p9) }
  0x1f   : > { %v1013_v20 = vld [vmem:[%s6433_s9 + $0x20] sm:$0xff] (!%p650_p9) }
  0x21   : > { %v727_v0 = vld [vmem:[%s6474_s0] sm:$0xff] (!%p650_p9)  ;;  %v728_v1 = vld [vmem:[%s6474_s0 + $0x8] sm:$0xff] (!%p650_p9)  ;;  %v729_v5 = vld [vmem:[%s6474_s0 + $0x10] sm:$0xff] (!%p650_p9) }
  0x22   : > { %v5325_v3 = vpack.c.bf16 (!%p650_p9), %v728_v1, %v727_v0 }
  0x23   : > { %s718_s6 = scalar_select %p717_p10, %s5765_s5, 1  ;;  %v4754_v7 = vld [vmem:[%s6476_s25] ss:$0 sm:$0xff] }
  0x24   : > { %5326 = vmatpush3.bf16.msra.mxu0 %v5325_v3  ;;  %v4756_v31 = vld [vmem:[%s6478_s28] ss:$0 sm:$0xff]  ;;  %s5621_s25 = smov [#allocation2]  }
  0x25   : > { %5079 = vmatprep.subr.mxu0 %v5619_v4  ;;  %s4751_s29 = sshll.u32 %s718_s6, 3  ;;  %s4928_s24 = sshll.u32 %s718_s6, 4  ;;  %v4762_v40 = vld [vmem:[%s6480_s26] ss:$0 sm:$0xff] }
  0x26   : > { %s720_s2 = scalar_lea.vmem %s6475_s1, %s4751_s29  ;;  %s6477_s29 = sld [smem:[#allocation12_spill]] }
  0x27   : > { %v726_v6 = vld [vmem:[%s720_s2] sm:$0xff]  ;;  %s6479_s2 = sld [smem:[#allocation17_spill]]  ;;  %s5557_s28 = sshll.u32 %s5621_s25, 4  ;;  %s5558_s28 = int_to_ptr.vmem [resolvable:$false] %s5557_s28 }
  0x28   : > { %5080 = vmatpush3.msra.mxu0 %v729_v5  ;;  %s5559_s0 = scalar_lea.vmem %s5558_s28, 512 }
  0x29   : > { %5082 = vmatmul.mubr.msk.f32.vlgmr.msra.gmra.mrb[0].mxu0 %vm737_vm1, %v726_v6 }
  0x2c   : > { %s725_s3 = scalar_lea.vmem %s6477_s29, %s4928_s24  ;;  %s6481_s24 = sld [smem:[#allocation18_spill]] }
  0x2d   : > { %v842_v13 = vld [vmem:[%s725_s3] sm:$0xff]  ;;  %v843_v14 = vld [vmem:[%s725_s3 + $0x8] sm:$0xff]  ;;  %s714_s3 = sand.u32 1, %s5607_s30  }
  0x2e   : > { %847 = vperm.xlu1 %5452, %v842_v13   ;;  %vm858_vm5 = vcmp.ge.s32.totalorder %v842_v13, 8  ;;  %vm859_vm6 = vcmp.ge.s32.totalorder %v843_v14, 8  ;;  %v4757_v34 = vld [vmem:[%s6479_s2] ss:$0 sm:$0xff]  ;;  %s4750_s4 = sshll.u32 %s714_s3, 4  ;;  %s4929_s2 = sshll.u32 %s5765_s5, 8 }
  0x2f   : > { %v4760_v24 = vsel %vm858_vm5, 1.0, %v5619_v4  ;;  %v4761_v25 = vsel %vm859_vm6, 1.0, %v5619_v4  ;;  %s716_s6 = scalar_lea.vmem [#allocation2], %s4750_s4  ;;  %s6381_s29 = scalar_lea.hbm %s6447_s23, %s4929_s2 }
  0x30   : > { %v5454_v26 = vpack.i.bf16 %v4761_v25, %v4760_v24  ;;  %s4672_s1 = sshll.u32 %s716_s6, 4  ;;  %s6383_s4 = scalar_lea.sflag [#allocation3], %s714_s3  ;;  %s6376_s1 = int_to_ptr.vmem [resolvable:$true] %s4672_s1 }
  0x31   : > { %s5553_s5 = scalar_lea.vmem %s6376_s1, 256  ;;  %p5560_p0 = scmp.lt.s32.totalorder %s6376_s1, %s5558_s28 }
  0x32   : > { %850 = vperm.xlu1 %5452, %v843_v14   ;;  %s6482_s27 = smov %s6481_s24  ;;  %p5554_p11 = scmp.ne.s32.totalorder %s6376_s1, %s5553_s5 }
  0x33   : > { %p5561_p1 = scmp.lt.s32.totalorder %s5559_s0, %s5553_s5 }
  0x34   : > { %p5555_p12 = pnand %p5554_p11, %p5782_p5 }
  0x35   : > { %p5562_p2 = por %p5561_p1, %p5560_p0 }
  0x36   : > { %p5556_p13 = pneg %p5555_p12 }
  0x38   : > { %p5563_p3 = pnand %p5562_p2, %p5556_p13 }
  0xad   : > { %v848_v22 = vpop.permute.xlu1 %847 }
  0xae   : > { %vm852_vm4 = vcmp.eq.s32.totalorder %v848_v22, %v845_v21 }
  0xaf   : > { %v4758_v23 = vsel %vm852_vm4, 1.0, %v5619_v4 }
  0xb0   : > { %5086 = vmatprep.mubr.msk.f32.mxu1 %vm883_vm3, %v4758_v23 }
  0xb1   : > { %v851_v33 = vpop.permute.xlu1 %850 }
  0xb2   : > { %vm853_vm7 = vcmp.eq.s32.totalorder %v851_v33, %v845_v21  ;;  %v1014_v21 = vld [vmem:[%s6433_s9 + $0x28] sm:$0xff] }
  0xb3   : > { %v4759_v37 = vsel %vm853_vm7, 1.0, %v5619_v4 }
  0xfc   : > { %v807_v8 = vpop.f32.mrb[0].mxu0 }
  0xfd   : > { %v808_v9 = vadd.f32 %v4754_v7, %v807_v8  ;;  %v5083_v10 = vpop.f32.mrb[1].mxu0  ;;  %v4765_v7 = vld [vmem:[%s6481_s24] ss:$0 sm:$0xff] }
  0xff   : > { %v814_v11 = vsel %vm813_vm2, %v808_v9, 0.0 }
 0x100   : > { %815 = vadd.xlane.f32.xlu0 %v814_v11  ;;  %v4766_v11 = vld [vmem:[%s6483_s8] ss:$0 sm:$0xff] }
 0x18d   : > { %v816_v15 = vpop.xlane.xlu0 %815 }
 0x18e   : > { %v818_v16 = vmul.f32 0.03125, %v816_v15  ;;  %v4826_v15 = vld [vmem:[%s6433_s9 + $0x80] sm:$0xff] }
 0x190   : > { %v819_v17 = vsub.f32 %v808_v9, %v818_v16 }
 0x192   : > { %v820_v18 = vmul.f32 %v819_v17, %v819_v17 }
 0x194   : > { %v821_v19 = vsel %vm813_vm2, %v820_v18, 0.0  ;;  %v1011_v18 = vld [vmem:[%s6433_s9 + $0x10] sm:$0xff] }
 0x195   : > { %822 = vadd.xlane.f32.xlu0 %v821_v19  ;;  %v1012_v19 = vld [vmem:[%s6433_s9 + $0x18] sm:$0xff] }
 0x1ab   : > { %5455 = vperm.xlu0 %5453, %v5454_v26  }
 0x222   : > { %v823_v27 = vpop.xlane.xlu0 %822 }
 0x223   : > { %v824_v28 = vmul.f32 0.03125, %v823_v27 }
 0x225   : > { %v825_v29 = vadd.f32 1e-06, %v824_v28 }
 0x227   : > { %5459 = vrsqrt.f32 %v825_v29 }
 0x22a   : > { %v5456_v38 = vpop.permute.xlu0 %5455 }
 0x22b   : > { %v5457_v39 = vunpack.i.l.bf16 %v5456_v38  ;;  %v5458_v41 = vunpack.i.h.bf16 %v5456_v38  ;;  %v1018_v38 = vld [vmem:[%s6433_s9 + $0x48] sm:$0xff] }
 0x22d   : > { %v881_v42 = vmul.f32 %v5457_v39, %v4762_v40  ;;  %v882_v43 = vmul.f32 %v5458_v41, %v4762_v40 }
 0x231   : > { %v5460_v30 = vpop.eup %5459 }
 0x232   : > { %v827_v32 = vmul.f32 %v5460_v30, %v819_v17  ;;  %v1010_v17 = vld [vmem:[%s6433_s9 + $0x8] sm:$0xff] }
 0x234   : > { %v834_v35 = vmul.f32 %v4756_v31, %v827_v32 }
 0x236   : > { %v841_v36 = vadd.f32 %v4757_v34, %v834_v35  ;;  %v1015_v35 = vld [vmem:[%s6433_s9 + $0x30] sm:$0xff] }
 0x238   : > { %5084 = vmatprep.subr.mxu1 %v841_v36 }
 0x239   : > { %5085 = vmatpush3.msra.mxu1 %v841_v36  ;;  %v1016_v36 = vld [vmem:[%s6433_s9 + $0x38] sm:$0xff] }
 0x23a   : > { %5087 = vmatmul.mubr.msk.f32.vlgmr.msra.gmra.mrb[0].mxu1 %vm883_vm3, %v4759_v37  ;;  %v1017_v37 = vld [vmem:[%s6433_s9 + $0x40] sm:$0xff] }
 0x23b   : > { %5093 = vmatprep.mubr.msk.f32.mxu1 %vm813_vm2, %v1009_v62 }
 0x30d   : > { %v5088_v44 = vpop.f32.mrb[0].mxu1 }
 0x30e   : > { %v956_v45 = vpop.f32.mrb[1].mxu1  ;;  %v5827_v47 = vadd.f32 %v5088_v44, %v882_v43  ;;  %v1022_v43 = vld [vmem:[%s6434_s10 + $0x8] sm:$0xff] }
 0x30f   : > { %v5825_v46 = vadd.f32 %v956_v45, %v881_v42 }
 0x310   : > { %v970_v49 = vsel %vm813_vm2, %v5827_v47, 0.0 }
 0x311   : > { %v967_v48 = vsel %vm813_vm2, %v5825_v46, 0.0 }
 0x312   : > { %968 = vadd.xlane.f32.xlu1 %v967_v48 }
 0x316   : > { %971 = vadd.xlane.f32.xlu1 %v970_v49 }
 0x39f   : > { %v969_v50 = vpop.xlane.xlu1 %968 }
 0x3a0   : > { %v973_v51 = vmul.f32 0.03125, %v969_v50 }
 0x3a2   : > { %v975_v52 = vsub.f32 %v5825_v46, %v973_v51 }
 0x3a3   : > { %v972_v53 = vpop.xlane.xlu1 %971 }
 0x3a4   : > { %v974_v54 = vmul.f32 0.03125, %v972_v53  ;;  %v977_v55 = vmul.f32 %v975_v52, %v975_v52 }
 0x3a6   : > { %v976_v56 = vsub.f32 %v5827_v47, %v974_v54  ;;  %v979_v57 = vsel %vm813_vm2, %v977_v55, 0.0 }
 0x3a7   : > { %980 = vadd.xlane.f32.xlu1 %v979_v57 }
 0x3a8   : > { %v978_v58 = vmul.f32 %v976_v56, %v976_v56 }
 0x3aa   : > { %v982_v59 = vsel %vm813_vm2, %v978_v58, 0.0  ;;  %v1029_v58 = vld [vmem:[%s6434_s10 + $0x40] sm:$0xff] }
 0x3ab   : > { %983 = vadd.xlane.f32.xlu0 %v982_v59 }
 0x3b8   : > { %1035 = vperm.xlu1 %5452, %v1021_v60  }
 0x3bc   : > { %1055 = vperm.xlu1 %5452, %v1025_v61  }
 0x434   : > { %v981_v63 = vpop.xlane.xlu1 %980 }
 0x435   : > { %v985_v0 = vmul.f32 0.03125, %v981_v63 }
 0x437   : > { %v987_v1 = vadd.f32 1e-06, %v985_v0 }
 0x438   : > { %v984_v2 = vpop.xlane.xlu0 %983  ;;  %v1036_v23 = vpop.permute.xlu1 %1035 }
 0x439   : > { %5461 = vrsqrt.f32 %v987_v1  ;;  %v986_v3 = vmul.f32 0.03125, %v984_v2 }
 0x43b   : > { %v988_v4 = vadd.f32 1e-06, %v986_v3 }
 0x43c   : > { %v1056_v30 = vpop.permute.xlu1 %1055 }
 0x43d   : > { %5463 = vrsqrt.f32 %v988_v4 }
 0x443   : > { %v5462_v5 = vpop.eup %5461 }
 0x444   : > { %v991_v6 = vmul.f32 %v5462_v5, %v975_v52 }
 0x446   : > { %v999_v10 = vmul.f32 %v4765_v7, %v991_v6 }
 0x447   : > { %v5464_v8 = vpop.eup %5463 }
 0x448   : > { %v992_v9 = vmul.f32 %v5464_v8, %v976_v56  ;;  %v1007_v13 = vadd.f32 %v4766_v11, %v999_v10  ;;  %v1026_v56 = vld [vmem:[%s6434_s10 + $0x28] sm:$0xff] }
 0x44a   : > { %v1000_v12 = vmul.f32 %v4765_v7, %v992_v9 }
 0x44c   : > { %v1008_v14 = vadd.f32 %v4766_v11, %v1000_v12 }
 0x44e   : > { %v5327_v16 = vpack.c.bf16 %v1008_v14, %v1007_v13 }
 0x450   : > { %5329 = vmatprep.subr.msk.bf16.mxu1 %vm5855_vm8, %v5327_v16 }
 0x451   : > { %5332 = vmatpush3.bf16.xpose.msk.msra.mxu1 %vm5855_vm8, %v5327_v16 }
 0x458   : > { %5094 = vmatmul.mubr.msk.f32.vlgmr.msra.gmra.mrb[2].mxu1 %vm813_vm2, %v1010_v17 }
 0x459   : > { %5096 = vmatprep.mubr.msk.f32.mxu1 %vm813_vm2, %v1011_v18 }
 0x45c   : > { %5097 = vmatmul.mubr.msk.f32.gmra.mrb[4].mxu1 %vm813_vm2, %v1012_v19 }
 0x45d   : > { %5099 = vmatprep.mubr.msk.f32.mxu1 %vm813_vm2, %v1013_v20 }
 0x460   : > { %5100 = vmatmul.mubr.msk.f32.gmra.mrb[6].mxu1 %vm813_vm2, %v1014_v21 }
 0x461   : > { %5102 = vmatprep.mubr.msk.f32.mxu1 %vm813_vm2, %v1015_v35 }
 0x464   : > { %5103 = vmatmul.mubr.msk.f32.gmra.mrb[8].mxu1 %vm813_vm2, %v1016_v36 }
 0x465   : > { %5105 = vmatprep.mubr.msk.f32.mxu1 %vm813_vm2, %v1017_v37 }
 0x468   : > { %5106 = vmatmul.mubr.msk.f32.gmra.mrb[10].mxu1 %vm813_vm2, %v1018_v38 }
 0x52b   : > { %v5095_v22 = vpop.f32.mrb[2].mxu1 }
 0x52c   : > { %v1201_v24 = vpop.f32.mrb[3].mxu1 }
 0x52d   : > { %v1202_v25 = vadd.f32 %v1201_v24, %v1036_v23 }
 0x52f   : > { %v1260_v26 = vmul.f32 0.35355338, %v1202_v25  ;;  %v5883_v27 = vpop.f32.mrb[4].mxu1 }
 0x530   : > { %v5885_v28 = vpop.f32.mrb[5].mxu1 }
 0x531   : > { %1268 = vxpose.xlu1.b32.start.end [1/1] (short) (narrow) %v1260_v26, 16 }
 0x533   : > { %v5101_v29 = vpop.f32.mrb[6].mxu1 }
 0x534   : > { %v1221_v31 = vpop.f32.mrb[7].mxu1 }
 0x535   : > { %v1222_v32 = vadd.f32 %v1221_v31, %v1056_v30 }
 0x537   : > { %5111 = vmatprep.subr.mxu0 %v1222_v32  ;;  %v5915_v57 = vpop.f32.mrb[8].mxu1 }
 0x538   : > { %5112 = vmatpush3.msra.mxu0 %v1222_v32  ;;  %v5920_v59 = vpop.f32.mrb[9].mxu1  ;;  %v1030_v32 = vld [vmem:[%s6434_s10 + $0x48] sm:$0xff] }
 0x53b   : > { %v5922_v60 = vpop.f32.mrb[10].mxu1 }
 0x53c   : > { %v1241_v61 = vpop.f32.mrb[11].mxu1 }
 0x5b1   : > { %v1284_v33 = vpop.trf.xlu1 }
 0x5b2   : > { %5113 = vmatprep.mubr.msk.f32.mxu0 %vm883_vm3, %v1284_v33  ;;  %v1023_v33 = vld [vmem:[%s6434_s10 + $0x10] sm:$0xff] }
 0x5b5   : > { %v1285_v34 = vpop.trf.xlu1 }
 0x5b6   : > { %5114 = vmatmul.mubr.msk.f32.vlgmr.msra.gmra.mrb[2].mxu0 %vm883_vm3, %v1285_v34  ;;  %v1027_v34 = vld [vmem:[%s6434_s10 + $0x30] sm:$0xff] }
 0x689   : > { %v5115_v39 = vpop.f32.mrb[2].mxu0 }
 0x68a   : > { %v1372_v40 = vpop.f32.mrb[3].mxu0  ;;  %v1385_v42 = vsel %vm1381_vm9, %v5115_v39, -inf }
 0x68b   : > { %v1382_v41 = vsel %vm1381_vm9, %v1372_v40, -inf }
 0x68c   : > { %1383 = vmax.xlane.f32.xlu0 %v1382_v41 }
 0x690   : > { %1386 = vmax.xlane.f32.xlu0 %v1385_v42 }
 0x6a6   : > { %1040 = vperm.xlu0 %5453, %v1022_v43  }
 0x719   : > { %v1384_v44 = vpop.xlane.xlu0 %1383 }
 0x71a   : > { %v1388_v45 = vsub.f32 %v1372_v40, %v1384_v44 }
 0x71c   : > { %v1390_v48 = vmul.f32 1.442695, %v1388_v45 }
 0x71d   : > { %v1387_v49 = vpop.xlane.xlu0 %1386 }
 0x71e   : > { %5465 = vpow2.f32 %v1390_v48  ;;  %v1389_v50 = vsub.f32 %v5115_v39, %v1387_v49  ;;  %v1265_v39 = vld [vmem:[%s6435_s11 + $0x8] sm:$0xff]  ;;  %v1264_v49 = vld [vmem:[%s6435_s11] sm:$0xff] }
 0x720   : > { %v1392_v51 = vmul.f32 1.442695, %v1389_v50 }
 0x722   : > { %5467 = vpow2.f32 %v1392_v51 }
 0x725   : > { %v1041_v62 = vpop.permute.xlu0 %1040 }
 0x726   : > { %v1207_v63 = vadd.f32 %v5095_v22, %v1041_v62  ;;  %v1024_v62 = vld [vmem:[%s6434_s10 + $0x18] sm:$0xff] }
 0x728   : > { %v5466_v52 = vpop.eup %5465  ;;  %v1261_v0 = vmul.f32 0.35355338, %v1207_v63 }
 0x729   : > { %v1394_v53 = vsel %vm1381_vm9, %v5466_v52, 0.0 }
 0x72a   : > { %1395 = vadd.xlane.f32.xlu0 %v1394_v53 }
 0x72c   : > { %v5468_v54 = vpop.eup %5467 }
 0x72d   : > { %v1397_v55 = vsel %vm1381_vm9, %v5468_v54, 0.0 }
 0x72e   : > { %1398 = vadd.xlane.f32.xlu1 %v1397_v55  ;;  %v1019_v55 = vld [vmem:[%s6433_s9 + $0x50] sm:$0xff] }
 0x72f   : > { %5108 = vmatprep.mubr.msk.f32.mxu1 %vm813_vm2, %v1019_v55 }
 0x73f   : > { %1060 = vperm.xlu1 %5452, %v1026_v56   ;;  %v1020_v56 = vld [vmem:[%s6433_s9 + $0x58] sm:$0xff] }
 0x740   : > { %1075 = vperm.xlu0 %5453, %v1029_v58   ;;  %5109 = vmatmul.mubr.msk.f32.gmra.mrb[12].mxu1 %vm813_vm2, %v1020_v56 }
 0x75e   : > { %1488 = vxpose.xlu0.b32.start.end [1/1] (short) (narrow) %v1261_v0, 16 }
 0x7b7   : > { %v1396_v1 = vpop.xlane.xlu0 %1395 }
 0x7b8   : > { %5469 = vrcp.f32 %v1396_v1 }
 0x7bb   : > { %v1399_v2 = vpop.xlane.xlu1 %1398 }
 0x7bc   : > { %5471 = vrcp.f32 %v1399_v2 }
 0x7bf   : > { %v1061_v3 = vpop.permute.xlu1 %1060  ;;  %v1076_v4 = vpop.permute.xlu0 %1075 }
 0x7c0   : > { %v1242_v5 = vadd.f32 %v1241_v61, %v1076_v4  ;;  %v1227_v7 = vadd.f32 %v5101_v29, %v1061_v3 }
 0x7c2   : > { %v5470_v6 = vpop.eup %5469  ;;  %5116 = vmatprep.subr.msk.mxu0 %vm1381_vm9, %v1242_v5 }
 0x7c3   : > { %5117 = vmatpush3.xpose.msk.msra.mxu0 %vm1381_vm9, %v1242_v5  ;;  %v1402_v8 = vmul.f32 %v5470_v6, %v5466_v52 }
 0x7c4   : > { %5121 = vmatprep.subr.mxu0 %v1227_v7 }
 0x7c5   : > { %5118 = vmatprep.mubr.msk.f32.mxu0 %vm1381_vm9, %v1402_v8 }
 0x7c6   : > { %v5472_v9 = vpop.eup %5471 }
 0x7c7   : > { %v1403_v10 = vmul.f32 %v5472_v9, %v5468_v54  ;;  %v1028_v9 = vld [vmem:[%s6434_s10 + $0x38] sm:$0xff] }
 0x7c9   : > { %5119 = vmatmul.mubr.msk.f32.vlgmr.msra.gmra.mrb[4].mxu0 %vm1381_vm9, %v1403_v10  ;;  %v1031_v10 = vld [vmem:[%s6434_s10 + $0x50] sm:$0xff] }
 0x7ca   : > { %5122 = vmatpush3.msra.mxu0 %v1227_v7 }
 0x7de   : > { %v1504_v11 = vpop.trf.xlu0 }
 0x7df   : > { %5123 = vmatprep.mubr.msk.f32.mxu0 %vm883_vm3, %v1504_v11 }
 0x7e2   : > { %v1505_v12 = vpop.trf.xlu0 }
 0x7e3   : > { %5124 = vmatmul.mubr.msk.f32.vlgmr.msra.gmra.mrb[6].mxu0 %vm883_vm3, %v1505_v12 }
 0x813   : > { %v5983_v11 = vpop.f32.mrb[12].mxu1 }
 0x814   : > { %v1251_v12 = vpop.f32.mrb[13].mxu1 }
 0x89c   : > { %v5120_v13 = vpop.f32.mrb[4].mxu0 }
 0x89d   : > { %v1479_v14 = vpop.f32.mrb[5].mxu0 }
 0x8b6   : > { %v5125_v16 = vpop.f32.mrb[6].mxu0 }
 0x8b7   : > { %v1592_v17 = vpop.f32.mrb[7].mxu0  ;;  %v1604_v18 = vsel %vm1381_vm9, %v5125_v16, -inf }
 0x8b8   : > { %1605 = vmax.xlane.f32.xlu0 %v1604_v18  ;;  %v1601_v19 = vsel %vm1381_vm9, %v1592_v17, -inf }
 0x8b9   : > { %1602 = vmax.xlane.f32.xlu1 %v1601_v19 }
 0x945   : > { %v1606_v20 = vpop.xlane.xlu0 %1605 }
 0x946   : > { %v1608_v21 = vsub.f32 %v5125_v16, %v1606_v20  ;;  %v1603_v22 = vpop.xlane.xlu1 %1602 }
 0x947   : > { %v1607_v23 = vsub.f32 %v1592_v17, %v1603_v22 }
 0x948   : > { %v1611_v24 = vmul.f32 1.442695, %v1608_v21 }
 0x949   : > { %v1609_v25 = vmul.f32 1.442695, %v1607_v23 }
 0x94a   : > { %5473 = vpow2.f32 %v1611_v24 }
 0x94b   : > { %5475 = vpow2.f32 %v1609_v25 }
 0x954   : > { %v5474_v26 = vpop.eup %5473 }
 0x955   : > { %v1616_v29 = vsel %vm1381_vm9, %v5474_v26, 0.0  ;;  %v5476_v30 = vpop.eup %5475 }
 0x956   : > { %1617 = vadd.xlane.f32.xlu1 %v1616_v29  ;;  %v1613_v31 = vsel %vm1381_vm9, %v5476_v30, 0.0 }
 0x95a   : > { %1614 = vadd.xlane.f32.xlu1 %v1613_v31 }
 0x96b   : > { %1080 = vperm.xlu1 %5452, %v1030_v32  }
 0x96f   : > { %1045 = vperm.xlu1 %5452, %v1023_v33  }
 0x973   : > { %1065 = vperm.xlu1 %5452, %v1027_v34  }
 0x9e3   : > { %v1618_v35 = vpop.xlane.xlu1 %1617 }
 0x9e4   : > { %5477 = vrcp.f32 %v1618_v35 }
 0x9e7   : > { %v1615_v36 = vpop.xlane.xlu1 %1614 }
 0x9e8   : > { %5479 = vrcp.f32 %v1615_v36 }
 0x9eb   : > { %v1081_v37 = vpop.permute.xlu1 %1080 }
 0x9ec   : > { %v1247_v38 = vadd.f32 %v5922_v60, %v1081_v37 }
 0x9ee   : > { %5126 = vmatprep.subr.msk.mxu0 %vm1381_vm9, %v1247_v38  ;;  %v5478_v42 = vpop.eup %5477 }
 0x9ef   : > { %5127 = vmatpush3.xpose.msk.msra.mxu0 %vm1381_vm9, %v1247_v38  ;;  %v1046_v40 = vpop.permute.xlu1 %1045  ;;  %v1622_v48 = vmul.f32 %v5478_v42, %v5474_v26 }
 0x9f0   : > { %v1212_v41 = vadd.f32 %v5885_v28, %v1046_v40  ;;  %5131 = vmatprep.subr.mxu0 %v1265_v39 }
 0x9f2   : > { %v5480_v43 = vpop.eup %5479  ;;  %v1262_v44 = vmul.f32 0.35355338, %v1212_v41 }
 0x9f3   : > { %v1621_v45 = vmul.f32 %v5480_v43, %v5476_v30  ;;  %v1066_v50 = vpop.permute.xlu1 %1065 }
 0x9f4   : > { %1869 = vxpose.xlu1.b32.start.end [1/1] (short) (narrow) %v1262_v44, 16  ;;  %v1232_v52 = vadd.f32 %v5920_v59, %v1066_v50 }
 0x9f5   : > { %5128 = vmatprep.mubr.msk.f32.mxu0 %vm1381_vm9, %v1621_v45 }
 0x9f6   : > { %5129 = vmatmul.mubr.msk.f32.vlgmr.msra.gmra.mrb[8].mxu0 %vm1381_vm9, %v1622_v48  ;;  %v1032_v48 = vld [vmem:[%s6434_s10 + $0x58] sm:$0xff] }
 0x9f7   : > { %5132 = vmatpush3.msra.mxu0 %v1265_v39 }
 0x9f8   : > { %5136 = vmatprep.subr.mxu0 %v1264_v49 }
 0xa74   : > { %v1885_v53 = vpop.trf.xlu1 }
 0xa78   : > { %v1886_v54 = vpop.trf.xlu1 }
 0xac9   : > { %v5130_v51 = vpop.f32.mrb[8].mxu0 }
 0xaca   : > { %v1698_v28 = vpop.f32.mrb[9].mxu0 }
 0xacb   : > { %5133 = vmatprep.mubr.msk.f32.mxu0 %vm883_vm3, %v1698_v28 }
 0xacc   : > { %5134 = vmatmul.mubr.msk.f32.vlgmr.msra.gmra.mrb[10].mxu0 %vm883_vm3, %v5130_v51 }
 0xacd   : > { %5137 = vmatpush3.msra.mxu0 %v1264_v49  ;;  %5138 = vmatprep.mubr.msk.f32.mxu0 %vm883_vm3, %v1479_v14 }
 0xace   : > { %5141 = vmatprep.subr.mxu0 %v1232_v52 }
 0xad4   : > { %5139 = vmatmul.mubr.msk.f32.vlgmr.msra.gmra.mrb[10].mxu0 %vm883_vm3, %v5120_v13 }
 0xad5   : > { %5142 = vmatpush3.msra.mxu0 %v1232_v52  ;;  %5143 = vmatprep.mubr.msk.f32.mxu0 %vm883_vm3, %v1885_v53  ;;  %v1267_v52 = vld [vmem:[%s6435_s11 + $0x18] sm:$0xff] }
 0xad8   : > { %5144 = vmatmul.mubr.msk.f32.vlgmr.msra.gmra.mrb[12].mxu0 %vm883_vm3, %v1886_v54 }
 0xbab   : > { %v5145_v58 = vpop.f32.mrb[12].mxu0 }
 0xbac   : > { %v1973_v59 = vpop.f32.mrb[13].mxu0  ;;  %v1985_v61 = vsel %vm1381_vm9, %v5145_v58, -inf }
 0xbad   : > { %v1982_v60 = vsel %vm1381_vm9, %v1973_v59, -inf }
 0xbae   : > { %1983 = vmax.xlane.f32.xlu0 %v1982_v60 }
 0xbb2   : > { %1986 = vmax.xlane.f32.xlu0 %v1985_v61  ;;  %v4809_v61 = vld [vmem:[%s6436_s12] ss:$0 sm:$0xff] }
 0xbc8   : > { %1050 = vperm.xlu0 %5453, %v1024_v62  }
 0xc3b   : > { %v1984_v63 = vpop.xlane.xlu0 %1983 }
 0xc3c   : > { %v1988_v0 = vsub.f32 %v1973_v59, %v1984_v63 }
 0xc3e   : > { %v1990_v1 = vmul.f32 1.442695, %v1988_v0 }
 0xc3f   : > { %v1987_v2 = vpop.xlane.xlu0 %1986 }
 0xc40   : > { %5481 = vpow2.f32 %v1990_v1  ;;  %v1989_v3 = vsub.f32 %v5145_v58, %v1987_v2 }
 0xc42   : > { %v1992_v4 = vmul.f32 1.442695, %v1989_v3 }
 0xc44   : > { %5483 = vpow2.f32 %v1992_v4 }
 0xc47   : > { %v1051_v13 = vpop.permute.xlu0 %1050 }
 0xc48   : > { %v1217_v14 = vadd.f32 %v5883_v27, %v1051_v13 }
 0xc4a   : > { %v5482_v5 = vpop.eup %5481  ;;  %v1263_v16 = vmul.f32 0.35355338, %v1217_v14  ;;  %v2528_v14 = vld [vmem:[%s6439_s15] sm:$0xff] }
 0xc4b   : > { %v1994_v6 = vsel %vm1381_vm9, %v5482_v5, 0.0 }
 0xc4c   : > { %1995 = vadd.xlane.f32.xlu0 %v1994_v6 }
 0xc4e   : > { %v5484_v7 = vpop.eup %5483 }
 0xc4f   : > { %v1997_v8 = vsel %vm1381_vm9, %v5484_v7, 0.0 }
 0xc50   : > { %1998 = vadd.xlane.f32.xlu1 %v1997_v8 }
 0xc61   : > { %1070 = vperm.xlu1 %5452, %v1028_v9  }
 0xc62   : > { %1085 = vperm.xlu0 %5453, %v1031_v10  }
 0xc80   : > { %2171 = vxpose.xlu0.b32.start.end [1/1] (short) (narrow) %v1263_v16, 16  ;;  %v2529_v16 = vld [vmem:[%s6439_s15 + $0x8] sm:$0xff] }
 0xcd9   : > { %v1996_v17 = vpop.xlane.xlu0 %1995 }
 0xcda   : > { %5485 = vrcp.f32 %v1996_v17  ;;  %v5333_v17 = vpack.c.bf16 %v2529_v16, %v2528_v14 }
 0xcdd   : > { %v1999_v18 = vpop.xlane.xlu1 %1998 }
 0xcde   : > { %5487 = vrcp.f32 %v1999_v18  ;;  %v2530_v18 = vld [vmem:[%s6439_s15 + $0x10] sm:$0xff] }
 0xce1   : > { %v1071_v19 = vpop.permute.xlu1 %1070  ;;  %v1086_v20 = vpop.permute.xlu0 %1085 }
 0xce2   : > { %v1252_v21 = vadd.f32 %v1251_v12, %v1086_v20  ;;  %v1237_v23 = vadd.f32 %v5915_v57, %v1071_v19  ;;  %v1266_v57 = vld [vmem:[%s6435_s11 + $0x10] sm:$0xff]  ;;  %v2531_v19 = vld [vmem:[%s6439_s15 + $0x18] sm:$0xff] }
 0xce3   : > { %5151 = vmatprep.subr.mxu0 %v1266_v57  ;;  %v5337_v20 = vpack.c.bf16 %v2531_v19, %v2530_v18 }
 0xce4   : > { %v5486_v22 = vpop.eup %5485  ;;  %5146 = vmatprep.subr.msk.mxu1 %vm1381_vm9, %v1252_v21  ;;  %5152 = vmatpush3.msra.mxu0 %v1266_v57 }
 0xce5   : > { %5147 = vmatpush3.xpose.msk.msra.mxu1 %vm1381_vm9, %v1252_v21  ;;  %v2002_v24 = vmul.f32 %v5486_v22, %v5482_v5  ;;  %v4838_v5 = vld [vmem:[%s6434_s10 + $0x80] sm:$0xff] }
 0xce6   : > { %5156 = vmatprep.subr.mxu1 %v1237_v23 }
 0xce7   : > { %5148 = vmatprep.mubr.msk.f32.mxu1 %vm1381_vm9, %v2002_v24 }
 0xce8   : > { %v5488_v27 = vpop.eup %5487 }
 0xce9   : > { %v2003_v25 = vmul.f32 %v5488_v27, %v5484_v7 }
 0xceb   : > { %5149 = vmatmul.mubr.msk.f32.vlgmr.msra.gmra.mrb[14].mxu1 %vm1381_vm9, %v2003_v25 }
 0xcec   : > { %5157 = vmatpush3.msra.mxu1 %v1237_v23 }
 0xced   : > { %5334 = vmatprep.subr.bf16.mxu1 %v5333_v17 }
 0xd00   : > { %v2187_v26 = vpop.trf.xlu0 }
 0xd01   : > { %5158 = vmatprep.mubr.msk.f32.mxu1 %vm883_vm3, %v2187_v26 }
 0xd04   : > { %v2188_v29 = vpop.trf.xlu0 }
 0xd05   : > { %5159 = vmatmul.mubr.msk.f32.vlgmr.msra.gmra.mrb[16].mxu1 %vm883_vm3, %v2188_v29  ;;  %v4810_v29 = vld [vmem:[%s6437_s13] ss:$0 sm:$0xff] }
 0xd06   : > { %5336 = vmatpush3.bf16.msra.mxu1 %v5333_v17 }
 0xd07   : > { %5338 = vmatprep.subr.bf16.mxu1 %v5337_v20 }
 0xd0a   : > { %5340 = vmatpush3.bf16.msra.mxu1 %v5337_v20 }
 0xdbe   : > { %v5150_v30 = vpop.f32.mrb[14].mxu1 }
 0xdbf   : > { %v2079_v31 = vpop.f32.mrb[15].mxu1 }
 0xdc0   : > { %5153 = vmatprep.mubr.msk.f32.mxu0 %vm883_vm3, %v2079_v31 }
 0xdc1   : > { %5154 = vmatmul.mubr.msk.f32.vlgmr.msra.gmra.mrb[10].mxu0 %vm883_vm3, %v5150_v30  ;;  %v4811_v30 = vld [vmem:[%s6438_s14] ss:$0 sm:$0xff] }
 0xdd8   : > { %v5160_v32 = vpop.f32.mrb[16].mxu1 }
 0xdd9   : > { %v2275_v33 = vpop.f32.mrb[17].mxu1  ;;  %v2287_v34 = vsel %vm1381_vm9, %v5160_v32, -inf }
 0xdda   : > { %2288 = vmax.xlane.f32.xlu0 %v2287_v34  ;;  %v2284_v35 = vsel %vm1381_vm9, %v2275_v33, -inf }
 0xddb   : > { %2285 = vmax.xlane.f32.xlu1 %v2284_v35 }
 0xe67   : > { %v2289_v36 = vpop.xlane.xlu0 %2288 }
 0xe68   : > { %v2291_v37 = vsub.f32 %v5160_v32, %v2289_v36  ;;  %v2286_v38 = vpop.xlane.xlu1 %2285 }
 0xe69   : > { %v2290_v39 = vsub.f32 %v2275_v33, %v2286_v38  ;;  %v2639_v38 = vld [vmem:[%s6441_s17 + $0x8] sm:$0xff] }
 0xe6a   : > { %v2294_v40 = vmul.f32 1.442695, %v2291_v37  ;;  %v2638_v37 = vld [vmem:[%s6441_s17] sm:$0xff] }
 0xe6b   : > { %v2292_v41 = vmul.f32 1.442695, %v2290_v39  ;;  %v5341_v39 = vpack.c.bf16 %v2639_v38, %v2638_v37  ;;  %v4820_v38 = vld [vmem:[%s6482_s27 + $0x1] ss:$0 sm:$0xff] }
 0xe6c   : > { %5489 = vpow2.f32 %v2294_v40  ;;  %v2640_v40 = vld [vmem:[%s6441_s17 + $0x10] sm:$0xff] }
 0xe6d   : > { %5491 = vpow2.f32 %v2292_v41  ;;  %v2641_v41 = vld [vmem:[%s6441_s17 + $0x18] sm:$0xff] }
 0xe76   : > { %v5490_v42 = vpop.eup %5489 }
 0xe77   : > { %v2299_v43 = vsel %vm1381_vm9, %v5490_v42, 0.0  ;;  %v5492_v44 = vpop.eup %5491 }
 0xe78   : > { %2300 = vadd.xlane.f32.xlu1 %v2299_v43  ;;  %v2296_v45 = vsel %vm1381_vm9, %v5492_v44, 0.0  ;;  %v2642_v43 = vld [vmem:[%s6441_s17 + $0x20] sm:$0xff] }
 0xe7c   : > { %2297 = vadd.xlane.f32.xlu1 %v2296_v45 }
 0xe8d   : > { %1090 = vperm.xlu1 %5452, %v1032_v48   ;;  %v2644_v48 = vld [vmem:[%s6441_s17 + $0x30] sm:$0xff] }
 0xf05   : > { %v2301_v49 = vpop.xlane.xlu1 %2300 }
 0xf06   : > { %5493 = vrcp.f32 %v2301_v49  ;;  %v2645_v49 = vld [vmem:[%s6441_s17 + $0x38] sm:$0xff] }
 0xf09   : > { %v2298_v50 = vpop.xlane.xlu1 %2297 }
 0xf0a   : > { %5495 = vrcp.f32 %v2298_v50  ;;  %v5353_v50 = vpack.c.bf16 %v2645_v49, %v2644_v48  ;;  %v4823_v49 = vld [vmem:[%s6433_s9 + $0x68] sm:$0xff] }
 0xf0d   : > { %v1091_v51 = vpop.permute.xlu1 %1090 }
 0xf0e   : > { %v1257_v28 = vadd.f32 %v5983_v11, %v1091_v51  ;;  %v4812_v51 = vld [vmem:[%s6440_s16] ss:$0 sm:$0xff] }
 0xf10   : > { %5161 = vmatprep.subr.msk.mxu0 %vm1381_vm9, %v1257_v28  ;;  %v5494_v53 = vpop.eup %5493 }
 0xf11   : > { %5162 = vmatpush3.xpose.msk.msra.mxu0 %vm1381_vm9, %v1257_v28  ;;  %v2305_v56 = vmul.f32 %v5494_v53, %v5490_v42  ;;  %v5345_v42 = vpack.c.bf16 %v2641_v41, %v2640_v40 }
 0xf12   : > { %5166 = vmatprep.subr.mxu0 %v1267_v52 }
 0xf14   : > { %v5496_v54 = vpop.eup %5495 }
 0xf15   : > { %v2304_v55 = vmul.f32 %v5496_v54, %v5492_v44  ;;  %v2643_v44 = vld [vmem:[%s6441_s17 + $0x28] sm:$0xff] }
 0xf16   : > { %v5349_v45 = vpack.c.bf16 %v2643_v44, %v2642_v43 }
 0xf17   : > { %5163 = vmatprep.mubr.msk.f32.mxu0 %vm1381_vm9, %v2304_v55 }
 0xf18   : > { %5164 = vmatmul.mubr.msk.f32.vlgmr.msra.gmra.mrb[14].mxu0 %vm1381_vm9, %v2305_v56 }
 0xf19   : > { %5167 = vmatpush3.msra.mxu0 %v1267_v52 }
 0xf1a   : > { %5342 = vmatprep.subr.bf16.mxu0 %v5341_v39 }
 0xfeb   : > { %v5165_v58 = vpop.f32.mrb[14].mxu0 }
 0xfec   : > { %v2381_v59 = vpop.f32.mrb[15].mxu0 }
 0xfed   : > { %5168 = vmatprep.mubr.msk.f32.mxu0 %vm883_vm3, %v2381_v59 }
 0xfee   : > { %5169 = vmatmul.mubr.msk.f32.vlgmr.msra.gmra.mrb[10].mxu0 %vm883_vm3, %v5165_v58 }
 0xfef   : > { %5344 = vmatpush3.bf16.msra.mxu0 %v5341_v39 }
 0xff0   : > { %5346 = vmatprep.subr.bf16.mxu0 %v5345_v42 }
 0xff3   : > { %5348 = vmatpush3.bf16.msra.mxu0 %v5345_v42  ;;  %v4821_v42 = vld [vmem:[%s6483_s8 + $0x1] ss:$0 sm:$0xff] }
 0xff4   : > { %5350 = vmatprep.subr.bf16.mxu0 %v5349_v45 }
 0xff7   : > { %5352 = vmatpush3.bf16.msra.mxu0 %v5349_v45 }
 0xff8   : > { %5354 = vmatprep.subr.bf16.mxu0 %v5353_v50 }
 0xffb   : > { %5356 = vmatpush3.bf16.msra.mxu0 %v5353_v50  ;;  %v4824_v50 = vld [vmem:[%s6433_s9 + $0x70] sm:$0xff] }
0x10c1   : > { %v5170_v60 = vpop.f32.mrb[10].mxu0 }
0x10c2   : > { %v2474_v62 = vadd.f32 %v5170_v60, %v5827_v47  ;;  %v2462_v63 = vpop.f32.mrb[11].mxu0 }
0x10c3   : > { %v2473_v0 = vadd.f32 %v2462_v63, %v5825_v46 }
0x10c4   : > { %v6020_v1 = vadd.f32 %v4809_v61, %v2474_v62 }
0x10c5   : > { %v6022_v2 = vadd.f32 %v4809_v61, %v2473_v0 }
0x10c6   : > { %v2489_v3 = vsel %vm813_vm2, %v6020_v1, 0.0 }
0x10c7   : > { %2490 = vadd.xlane.f32.xlu0 %v2489_v3  ;;  %v2486_v4 = vsel %vm813_vm2, %v6022_v2, 0.0 }
0x10c8   : > { %2487 = vadd.xlane.f32.xlu1 %v2486_v4 }
0x10d9   : > { %2831 = vperm.xlu1 %5452, %v4838_v5  }
0x1154   : > { %v2491_v47 = vpop.xlane.xlu0 %2490 }
0x1155   : > { %v2493_v6 = vmul.f32 0.03125, %v2491_v47  ;;  %v2488_v46 = vpop.xlane.xlu1 %2487 }
0x1156   : > { %v2492_v7 = vmul.f32 0.03125, %v2488_v46 }
0x1157   : > { %v2495_v8 = vsub.f32 %v6020_v1, %v2493_v6 }
0x1158   : > { %v2494_v9 = vsub.f32 %v6022_v2, %v2492_v7 }
0x1159   : > { %v2497_v12 = vmul.f32 %v2495_v8, %v2495_v8 }
0x115a   : > { %v2496_v10 = vmul.f32 %v2494_v9, %v2494_v9 }
0x115b   : > { %v2501_v13 = vsel %vm813_vm2, %v2497_v12, 0.0 }
0x115c   : > { %v2498_v11 = vsel %vm813_vm2, %v2496_v10, 0.0  ;;  %v4815_v10 = vld [vmem:[%s6442_s18] ss:$0 sm:$0xff] }
0x115d   : > { %2499 = vadd.xlane.f32.xlu0 %v2498_v11 }
0x1161   : > { %2502 = vadd.xlane.f32.xlu0 %v2501_v13 }
0x11ea   : > { %v2500_v21 = vpop.xlane.xlu0 %2499 }
0x11eb   : > { %v2504_v22 = vmul.f32 0.03125, %v2500_v21 }
0x11ed   : > { %v2506_v23 = vadd.f32 1e-06, %v2504_v22 }
0x11ee   : > { %v2503_v24 = vpop.xlane.xlu0 %2502 }
0x11ef   : > { %5497 = vrsqrt.f32 %v2506_v23  ;;  %v2505_v27 = vmul.f32 0.03125, %v2503_v24 }
0x11f1   : > { %v2507_v25 = vadd.f32 1e-06, %v2505_v27 }
0x11f3   : > { %5499 = vrsqrt.f32 %v2507_v25 }
0x11f9   : > { %v5498_v26 = vpop.eup %5497 }
0x11fa   : > { %v2510_v57 = vmul.f32 %v5498_v26, %v2494_v9 }
0x11fc   : > { %v2518_v31 = vmul.f32 %v4810_v29, %v2510_v57  ;;  %v4822_v57 = vld [vmem:[%s6433_s9 + $0x60] sm:$0xff] }
0x11fd   : > { %v5500_v32 = vpop.eup %5499 }
0x11fe   : > { %v2511_v33 = vmul.f32 %v5500_v32, %v2495_v8  ;;  %v2526_v34 = vadd.f32 %v4811_v30, %v2518_v31 }
0x1200   : > { %v2519_v35 = vmul.f32 %v4810_v29, %v2511_v33  ;;  %5179 = vmatprep.mubr.msk.f32.mxu1 %vm813_vm2, %v2526_v34  ;;  %v4834_v29 = vld [vmem:[%s6434_s10 + $0x60] sm:$0xff] }
0x1202   : > { %v2527_v36 = vadd.f32 %v4811_v30, %v2519_v35 }
0x1204   : > { %5180 = vmatmul.mubr.msk.f32.vlgmr.msra.gmra.mrb[18].mxu1 %vm813_vm2, %v2527_v36 }
0x1205   : > { %5205 = vmatprep.mubr.msk.f32.mxu1 %vm813_vm2, %v4822_v57 }
0x12d7   : > { %v5181_v28 = vpop.f32.mrb[18].mxu1 }
0x12d8   : > { %v2617_v52 = vadd.f32 %v5181_v28, %v4812_v51  ;;  %v2611_v53 = vpop.f32.mrb[19].mxu1  ;;  %v4827_v28 = vld [vmem:[%s6433_s9 + $0x88] sm:$0xff] }
0x12d9   : > { %v2612_v54 = vadd.f32 %v4812_v51, %v2611_v53  ;;  %v4825_v51 = vld [vmem:[%s6433_s9 + $0x78] sm:$0xff] }
0x12da   : > { %v2623_v55 = vmul.f32 0.044715, %v2617_v52  ;;  %v2621_v7 = vmul.f32 0.5, %v2617_v52 }
0x12db   : > { %v2622_v56 = vmul.f32 0.044715, %v2612_v54  ;;  %v2620_v6 = vmul.f32 0.5, %v2612_v54 }
0x12dc   : > { %v2625_v58 = vmul.f32 %v2623_v55, %v2617_v52 }
0x12dd   : > { %v2624_v59 = vmul.f32 %v2622_v56, %v2612_v54 }
0x12de   : > { %v2627_v60 = vmul.f32 %v2625_v58, %v2617_v52 }
0x12df   : > { %v2626_v61 = vmul.f32 %v2624_v59, %v2612_v54 }
0x12e0   : > { %v2629_v62 = vadd.f32 %v2627_v60, %v2617_v52 }
0x12e1   : > { %v2628_v63 = vadd.f32 %v2626_v61, %v2612_v54  ;;  %v2832_v61 = vpop.permute.xlu1 %2831 }
0x12e2   : > { %v2631_v0 = vmul.f32 0.7978846, %v2629_v62 }
0x12e3   : > { %v2630_v3 = vmul.f32 0.7978846, %v2628_v63 }
0x12e4   : > { %5501 = vtanh.f32 %v2631_v0 }
0x12e5   : > { %5503 = vtanh.f32 %v2630_v3 }
0x12ee   : > { %v5502_v4 = vpop.eup %5501 }
0x12ef   : > { %v5504_v5 = vpop.eup %5503  ;;  %v2635_v47 = vadd.f32 1.0, %v5502_v4  ;;  %v4828_v4 = vld [vmem:[%s6433_s9 + $0x90] sm:$0xff] }
0x12f0   : > { %v2634_v46 = vadd.f32 1.0, %v5504_v5  ;;  %v4829_v5 = vld [vmem:[%s6433_s9 + $0x98] sm:$0xff] }
0x12f1   : > { %v2637_v9 = vmul.f32 %v2635_v47, %v2621_v7  ;;  %v4830_v47 = vld [vmem:[%s6433_s9 + $0xa0] sm:$0xff] }
0x12f2   : > { %v2636_v8 = vmul.f32 %v2634_v46, %v2620_v6  ;;  %v4831_v6 = vld [vmem:[%s6433_s9 + $0xa8] sm:$0xff] }
0x12f4   : > { %5198 = vmatprep.mubr.msk.f32.mxu0 %vm2653_vm10, %v2636_v8 }
0x12f5   : > { %5199 = vmatmul.mubr.msk.f32.vlgmr.msra.gmra.mrb[16].mxu0 %vm2653_vm10, %v2637_v9 }
0x13c8   : > { %v5200_v11 = vpop.f32.mrb[16].mxu0 }
0x13c9   : > { %v2726_v12 = vpop.f32.mrb[17].mxu0  ;;  %v2732_v13 = vadd.f32 %v5200_v11, %v4815_v10 }
0x13ca   : > { %v2727_v14 = vadd.f32 %v4815_v10, %v2726_v12  ;;  %v4835_v10 = vld [vmem:[%s6434_s10 + $0x68] sm:$0xff] }
0x13cb   : > { %v6091_v17 = vadd.f32 %v2732_v13, %v6020_v1 }
0x13cc   : > { %v6088_v16 = vadd.f32 %v2727_v14, %v6022_v2 }
0x13cd   : > { %v2744_v19 = vsel %vm813_vm2, %v6091_v17, 0.0 }
0x13ce   : > { %v2741_v18 = vsel %vm813_vm2, %v6088_v16, 0.0 }
0x13cf   : > { %2742 = vadd.xlane.f32.xlu0 %v2741_v18 }
0x13d3   : > { %2745 = vadd.xlane.f32.xlu0 %v2744_v19 }
0x145c   : > { %v2743_v20 = vpop.xlane.xlu0 %2742 }
0x145d   : > { %v2747_v21 = vmul.f32 0.03125, %v2743_v20 }
0x145f   : > { %v2749_v22 = vsub.f32 %v6088_v16, %v2747_v21 }
0x1460   : > { %v2746_v23 = vpop.xlane.xlu0 %2745 }
0x1461   : > { %v2748_v24 = vmul.f32 0.03125, %v2746_v23  ;;  %v2751_v27 = vmul.f32 %v2749_v22, %v2749_v22 }
0x1463   : > { %v2750_v2 = vsub.f32 %v6091_v17, %v2748_v24  ;;  %v2753_v1 = vsel %vm813_vm2, %v2751_v27, 0.0  ;;  %v4839_v24 = vld [vmem:[%s6434_s10 + $0x88] sm:$0xff]  ;;  %v4842_v27 = vld [vmem:[%s6434_s10 + $0xa0] sm:$0xff] }
0x1464   : > { %2754 = vadd.xlane.f32.xlu0 %v2753_v1 }
0x1465   : > { %v2752_v25 = vmul.f32 %v2750_v2, %v2750_v2 }
0x1467   : > { %v2756_v26 = vsel %vm813_vm2, %v2752_v25, 0.0 }
0x1468   : > { %2757 = vadd.xlane.f32.xlu0 %v2756_v26 }
0x147e   : > { %2811 = vperm.xlu0 %5453, %v4834_v29  }
0x14f1   : > { %v2755_v30 = vpop.xlane.xlu0 %2754 }
0x14f2   : > { %v2759_v31 = vmul.f32 0.03125, %v2755_v30 }
0x14f4   : > { %v2761_v32 = vadd.f32 1e-06, %v2759_v31 }
0x14f5   : > { %v2758_v33 = vpop.xlane.xlu0 %2757 }
0x14f6   : > { %5505 = vrsqrt.f32 %v2761_v32  ;;  %v2760_v34 = vmul.f32 0.03125, %v2758_v33 }
0x14f8   : > { %v2762_v35 = vadd.f32 1e-06, %v2760_v34 }
0x14fa   : > { %5507 = vrsqrt.f32 %v2762_v35 }
0x14fd   : > { %v2812_v53 = vpop.permute.xlu0 %2811 }
0x1500   : > { %v5506_v36 = vpop.eup %5505 }
0x1501   : > { %v2765_v37 = vmul.f32 %v5506_v36, %v2749_v22 }
0x1503   : > { %v2773_v41 = vmul.f32 %v4820_v38, %v2765_v37 }
0x1504   : > { %v5508_v39 = vpop.eup %5507 }
0x1505   : > { %v2766_v40 = vmul.f32 %v5508_v39, %v2750_v2  ;;  %v2781_v44 = vadd.f32 %v4821_v42, %v2773_v41 }
0x1507   : > { %v2774_v43 = vmul.f32 %v4820_v38, %v2766_v40 }
0x1509   : > { %v2782_v45 = vadd.f32 %v4821_v42, %v2774_v43 }
0x150b   : > { %v5357_v48 = vpack.c.bf16 %v2782_v45, %v2781_v44 }
0x150d   : > { %5359 = vmatprep.subr.msk.bf16.mxu1 %vm5855_vm8, %v5357_v48 }
0x150e   : > { %5362 = vmatpush3.bf16.xpose.msk.msra.mxu1 %vm5855_vm8, %v5357_v48 }
0x1515   : > { %5206 = vmatmul.mubr.msk.f32.vlgmr.msra.gmra.mrb[20].mxu1 %vm813_vm2, %v4823_v49 }
0x1516   : > { %5208 = vmatprep.mubr.msk.f32.mxu1 %vm813_vm2, %v4824_v50 }
0x1519   : > { %5209 = vmatmul.mubr.msk.f32.gmra.mrb[22].mxu1 %vm813_vm2, %v4825_v51  ;;  %v4836_v51 = vld [vmem:[%s6434_s10 + $0x70] sm:$0xff] }
0x151a   : > { %5211 = vmatprep.mubr.msk.f32.mxu1 %vm813_vm2, %v4826_v15 }
0x151d   : > { %5212 = vmatmul.mubr.msk.f32.gmra.mrb[24].mxu1 %vm813_vm2, %v4827_v28 }
0x151e   : > { %5214 = vmatprep.mubr.msk.f32.mxu1 %vm813_vm2, %v4828_v4 }
0x1521   : > { %5215 = vmatmul.mubr.msk.f32.gmra.mrb[26].mxu1 %vm813_vm2, %v4829_v5 }
0x1522   : > { %5217 = vmatprep.mubr.msk.f32.mxu1 %vm813_vm2, %v4830_v47  ;;  %v4832_v47 = vld [vmem:[%s6433_s9 + $0xb0] sm:$0xff] }
0x1525   : > { %5218 = vmatmul.mubr.msk.f32.gmra.mrb[28].mxu1 %vm813_vm2, %v4831_v6  ;;  %v4833_v6 = vld [vmem:[%s6433_s9 + $0xb8] sm:$0xff] }
0x1526   : > { %5220 = vmatprep.mubr.msk.f32.mxu1 %vm813_vm2, %v4832_v47 }
0x1529   : > { %5221 = vmatmul.mubr.msk.f32.gmra.mrb[30].mxu1 %vm813_vm2, %v4833_v6 }
0x15e8   : > { %v5207_v52 = vpop.f32.mrb[20].mxu1 }
0x15e9   : > { %v2977_v54 = vpop.f32.mrb[21].mxu1 }
0x15ea   : > { %v2978_v55 = vadd.f32 %v2977_v54, %v2812_v53 }
0x15ec   : > { %v3036_v56 = vmul.f32 0.35355338, %v2978_v55  ;;  %v6138_v58 = vpop.f32.mrb[22].mxu1 }
0x15ed   : > { %v6140_v59 = vpop.f32.mrb[23].mxu1 }
0x15ee   : > { %3045 = vxpose.xlu0.b32.start.end [1/1] (short) (narrow) %v3036_v56, 16 }
0x15f0   : > { %v5213_v60 = vpop.f32.mrb[24].mxu1 }
0x15f1   : > { %v2997_v62 = vpop.f32.mrb[25].mxu1 }
0x15f2   : > { %v2998_v63 = vadd.f32 %v2997_v62, %v2832_v61 }
0x15f4   : > { %5223 = vmatprep.subr.mxu0 %v2998_v63  ;;  %v6173_v2 = vpop.f32.mrb[26].mxu1 }
0x15f5   : > { %5224 = vmatpush3.msra.mxu0 %v2998_v63  ;;  %v6175_v1 = vpop.f32.mrb[27].mxu1  ;;  %v4840_v63 = vld [vmem:[%s6434_s10 + $0x90] sm:$0xff] }
0x15f8   : > { %v6177_v25 = vpop.f32.mrb[28].mxu1 }
0x15f9   : > { %v3017_v26 = vpop.f32.mrb[29].mxu1 }
0x166e   : > { %v3061_v0 = vpop.trf.xlu0 }
0x166f   : > { %5225 = vmatprep.mubr.msk.f32.mxu0 %vm883_vm3, %v3061_v0  ;;  %v4843_v0 = vld [vmem:[%s6434_s10 + $0xa8] sm:$0xff] }
0x1672   : > { %v3062_v3 = vpop.trf.xlu0 }
0x1673   : > { %5226 = vmatmul.mubr.msk.f32.vlgmr.msra.gmra.mrb[18].mxu0 %vm883_vm3, %v3062_v3 }
0x1746   : > { %v5227_v46 = vpop.f32.mrb[18].mxu0 }
0x1747   : > { %v3149_v7 = vpop.f32.mrb[19].mxu0  ;;  %v3161_v8 = vsel %vm1381_vm9, %v5227_v46, -inf }
0x1748   : > { %3162 = vmax.xlane.f32.xlu0 %v3161_v8  ;;  %v3158_v9 = vsel %vm1381_vm9, %v3149_v7, -inf }
0x1749   : > { %3159 = vmax.xlane.f32.xlu1 %v3158_v9 }
0x175a   : > { %2816 = vperm.xlu1 %5452, %v4835_v10  }
0x17d5   : > { %v3163_v11 = vpop.xlane.xlu0 %3162 }
0x17d6   : > { %v3165_v12 = vsub.f32 %v5227_v46, %v3163_v11  ;;  %v3160_v13 = vpop.xlane.xlu1 %3159 }
0x17d7   : > { %v3164_v14 = vsub.f32 %v3149_v7, %v3160_v13 }
0x17d8   : > { %v3168_v18 = vmul.f32 1.442695, %v3165_v12 }
0x17d9   : > { %v3166_v19 = vmul.f32 1.442695, %v3164_v14 }
0x17da   : > { %5509 = vpow2.f32 %v3168_v18  ;;  %v2817_v29 = vpop.permute.xlu1 %2816 }
0x17db   : > { %5511 = vpow2.f32 %v3166_v19  ;;  %v2983_v57 = vadd.f32 %v5207_v52, %v2817_v29 }
0x17dd   : > { %v3037_v30 = vmul.f32 0.35355338, %v2983_v57 }
0x17e4   : > { %v5510_v20 = vpop.eup %5509 }
0x17e5   : > { %v5512_v21 = vpop.eup %5511  ;;  %v3173_v22 = vsel %vm1381_vm9, %v5510_v20, 0.0 }
0x17e6   : > { %3174 = vadd.xlane.f32.xlu0 %v3173_v22  ;;  %v3170_v23 = vsel %vm1381_vm9, %v5512_v21, 0.0 }
0x17e7   : > { %3171 = vadd.xlane.f32.xlu1 %v3170_v23 }
0x17f8   : > { %2836 = vperm.xlu1 %5452, %v4839_v24  }
0x17fc   : > { %2851 = vperm.xlu0 %5453, %v4842_v27  }
0x181a   : > { %3264 = vxpose.xlu0.b32.start.end [1/1] (short) (narrow) %v3037_v30, 16 }
0x1873   : > { %v3175_v31 = vpop.xlane.xlu0 %3174 }
0x1874   : > { %5513 = vrcp.f32 %v3175_v31  ;;  %v3172_v32 = vpop.xlane.xlu1 %3171 }
0x1875   : > { %5515 = vrcp.f32 %v3172_v32 }
0x1878   : > { %v2837_v33 = vpop.permute.xlu1 %2836 }
0x1879   : > { %v3003_v37 = vadd.f32 %v5213_v60, %v2837_v33 }
0x187b   : > { %v2852_v34 = vpop.permute.xlu0 %2851 }
0x187c   : > { %v3018_v35 = vadd.f32 %v3017_v26, %v2852_v34  ;;  %v4837_v26 = vld [vmem:[%s6434_s10 + $0x78] sm:$0xff] }
0x187e   : > { %v5514_v36 = vpop.eup %5513  ;;  %5228 = vmatprep.subr.msk.mxu0 %vm1381_vm9, %v3018_v35 }
0x187f   : > { %v5516_v38 = vpop.eup %5515  ;;  %5229 = vmatpush3.xpose.msk.msra.mxu0 %vm1381_vm9, %v3018_v35  ;;  %v3179_v40 = vmul.f32 %v5514_v36, %v5510_v20  ;;  %v4861_v20 = vld [vmem:[%s6435_s11 + $0x28] sm:$0xff] }
0x1880   : > { %5233 = vmatprep.subr.mxu0 %v3003_v37  ;;  %v3178_v39 = vmul.f32 %v5516_v38, %v5512_v21  ;;  %5243 = vmatprep.subr.mxu1 %v4861_v20  ;;  %v4860_v21 = vld [vmem:[%s6435_s11 + $0x20] sm:$0xff]  ;;  %v4841_v38 = vld [vmem:[%s6434_s10 + $0x98] sm:$0xff] }
0x1881   : > { %5244 = vmatpush3.msra.mxu1 %v4861_v20 }
0x1882   : > { %5230 = vmatprep.mubr.msk.f32.mxu0 %vm1381_vm9, %v3178_v39  ;;  %5248 = vmatprep.subr.mxu1 %v4860_v21  ;;  %v4844_v39 = vld [vmem:[%s6434_s10 + $0xb0] sm:$0xff] }
0x1883   : > { %5231 = vmatmul.mubr.msk.f32.vlgmr.msra.gmra.mrb[20].mxu0 %vm1381_vm9, %v3179_v40  ;;  %v6244_v40 = vpop.f32.mrb[30].mxu1 }
0x1884   : > { %5234 = vmatpush3.msra.mxu0 %v3003_v37 }
0x189a   : > { %v3280_v41 = vpop.trf.xlu0 }
0x189b   : > { %5235 = vmatprep.mubr.msk.f32.mxu0 %vm883_vm3, %v3280_v41  ;;  %v3027_v41 = vpop.f32.mrb[31].mxu1 }
0x189e   : > { %v3281_v42 = vpop.trf.xlu0 }
0x189f   : > { %5236 = vmatmul.mubr.msk.f32.vlgmr.msra.gmra.mrb[22].mxu0 %vm883_vm3, %v3281_v42 }
0x1956   : > { %v6185_v43 = vpop.f32.mrb[20].mxu0 }
0x1957   : > { %v6187_v44 = vpop.f32.mrb[21].mxu0 }
0x1972   : > { %v5237_v45 = vpop.f32.mrb[22].mxu0 }
0x1973   : > { %v3368_v48 = vpop.f32.mrb[23].mxu0  ;;  %v3380_v49 = vsel %vm1381_vm9, %v5237_v45, -inf }
0x1974   : > { %3381 = vmax.xlane.f32.xlu0 %v3380_v49  ;;  %v3377_v50 = vsel %vm1381_vm9, %v3368_v48, -inf }
0x1975   : > { %3378 = vmax.xlane.f32.xlu1 %v3377_v50 }
0x1986   : > { %2821 = vperm.xlu1 %5452, %v4836_v51  }
0x1a01   : > { %v3382_v15 = vpop.xlane.xlu0 %3381 }
0x1a02   : > { %v3384_v28 = vsub.f32 %v5237_v45, %v3382_v15  ;;  %v3379_v52 = vpop.xlane.xlu1 %3378 }
0x1a03   : > { %v3383_v53 = vsub.f32 %v3368_v48, %v3379_v52 }
0x1a04   : > { %v3387_v54 = vmul.f32 1.442695, %v3384_v28 }
0x1a05   : > { %v3385_v55 = vmul.f32 1.442695, %v3383_v53 }
0x1a06   : > { %5517 = vpow2.f32 %v3387_v54  ;;  %v2822_v3 = vpop.permute.xlu1 %2821 }
0x1a07   : > { %5519 = vpow2.f32 %v3385_v55  ;;  %v2988_v4 = vadd.f32 %v6140_v59, %v2822_v3 }
0x1a09   : > { %v3038_v5 = vmul.f32 0.35355338, %v2988_v4 }
0x1a10   : > { %v5518_v56 = vpop.eup %5517 }
0x1a11   : > { %v5520_v60 = vpop.eup %5519  ;;  %v3392_v61 = vsel %vm1381_vm9, %v5518_v56, 0.0 }
0x1a12   : > { %3393 = vadd.xlane.f32.xlu0 %v3392_v61  ;;  %v3389_v62 = vsel %vm1381_vm9, %v5520_v60, 0.0 }
0x1a13   : > { %3390 = vadd.xlane.f32.xlu1 %v3389_v62 }
0x1a24   : > { %2841 = vperm.xlu1 %5452, %v4840_v63  }
0x1a28   : > { %2856 = vperm.xlu0 %5453, %v4843_v0  }
0x1a46   : > { %3645 = vxpose.xlu0.b32.start.end [1/1] (short) (narrow) %v3038_v5, 16 }
0x1a9f   : > { %v3394_v46 = vpop.xlane.xlu0 %3393 }
0x1aa0   : > { %5521 = vrcp.f32 %v3394_v46  ;;  %v3391_v7 = vpop.xlane.xlu1 %3390 }
0x1aa1   : > { %5523 = vrcp.f32 %v3391_v7 }
0x1aa4   : > { %v2842_v8 = vpop.permute.xlu1 %2841 }
0x1aa5   : > { %v3008_v11 = vadd.f32 %v6175_v1, %v2842_v8 }
0x1aa7   : > { %v2857_v59 = vpop.permute.xlu0 %2856 }
0x1aa8   : > { %v3023_v9 = vadd.f32 %v6177_v25, %v2857_v59 }
0x1aaa   : > { %v5522_v10 = vpop.eup %5521  ;;  %5238 = vmatprep.subr.msk.mxu0 %vm1381_vm9, %v3023_v9 }
0x1aab   : > { %v5524_v12 = vpop.eup %5523  ;;  %5239 = vmatpush3.xpose.msk.msra.mxu0 %vm1381_vm9, %v3023_v9  ;;  %v3398_v14 = vmul.f32 %v5522_v10, %v5518_v56  ;;  %v4845_v10 = vld [vmem:[%s6434_s10 + $0xb8] sm:$0xff] }
0x1aac   : > { %5253 = vmatprep.subr.mxu0 %v3008_v11  ;;  %v3397_v13 = vmul.f32 %v5524_v12, %v5520_v60 }
0x1aae   : > { %5240 = vmatprep.mubr.msk.f32.mxu0 %vm1381_vm9, %v3397_v13 }
0x1aaf   : > { %5241 = vmatmul.mubr.msk.f32.vlgmr.msra.gmra.mrb[24].mxu0 %vm1381_vm9, %v3398_v14 }
0x1ab0   : > { %5254 = vmatpush3.msra.mxu0 %v3008_v11 }
0x1ac6   : > { %v3661_v18 = vpop.trf.xlu0 }
0x1ac7   : > { %5255 = vmatprep.mubr.msk.f32.mxu0 %vm883_vm3, %v3661_v18  ;;  %v4863_v18 = vld [vmem:[%s6435_s11 + $0x38] sm:$0xff] }
0x1aca   : > { %v3662_v19 = vpop.trf.xlu0 }
0x1acb   : > { %5256 = vmatmul.mubr.msk.f32.vlgmr.msra.gmra.mrb[26].mxu0 %vm883_vm3, %v3662_v19 }
0x1b82   : > { %v5242_v22 = vpop.f32.mrb[24].mxu0 }
0x1b83   : > { %v3474_v23 = vpop.f32.mrb[25].mxu0 }
0x1b84   : > { %5245 = vmatprep.mubr.msk.f32.mxu1 %vm883_vm3, %v3474_v23 }
0x1b85   : > { %5246 = vmatmul.mubr.msk.f32.vlgmr.msra.gmra.mrb[32].mxu1 %vm883_vm3, %v5242_v22 }
0x1b86   : > { %5250 = vmatprep.mubr.msk.f32.mxu1 %vm883_vm3, %v6187_v44  ;;  %5249 = vmatpush3.msra.mxu1 %v4860_v21 }
0x1b8d   : > { %5251 = vmatmul.mubr.msk.f32.vlgmr.msra.gmra.mrb[32].mxu1 %vm883_vm3, %v6185_v43 }
0x1b9e   : > { %v5257_v24 = vpop.f32.mrb[26].mxu0 }
0x1b9f   : > { %v3749_v27 = vpop.f32.mrb[27].mxu0  ;;  %v3761_v1 = vsel %vm1381_vm9, %v5257_v24, -inf }
0x1ba0   : > { %3762 = vmax.xlane.f32.xlu0 %v3761_v1  ;;  %v3758_v25 = vsel %vm1381_vm9, %v3749_v27, -inf  ;;  %v4893_v1 = vld [vmem:[%s6436_s12 + $0x1] ss:$0 sm:$0xff] }
0x1ba1   : > { %3759 = vmax.xlane.f32.xlu1 %v3758_v25 }
0x1bb2   : > { %2826 = vperm.xlu1 %5452, %v4837_v26  }
0x1c2d   : > { %v3763_v29 = vpop.xlane.xlu0 %3762 }
0x1c2e   : > { %v3765_v57 = vsub.f32 %v5257_v24, %v3763_v29  ;;  %v3760_v30 = vpop.xlane.xlu1 %3759 }
0x1c2f   : > { %v3764_v31 = vsub.f32 %v3749_v27, %v3760_v30 }
0x1c30   : > { %v3768_v32 = vmul.f32 1.442695, %v3765_v57 }
0x1c31   : > { %v3766_v33 = vmul.f32 1.442695, %v3764_v31 }
0x1c32   : > { %5525 = vpow2.f32 %v3768_v32  ;;  %v2827_v42 = vpop.permute.xlu1 %2826 }
0x1c33   : > { %5527 = vpow2.f32 %v3766_v33  ;;  %v2993_v43 = vadd.f32 %v6138_v58, %v2827_v42  ;;  %v4899_v42 = vld [vmem:[%s6439_s15 + $0x28] sm:$0xff] }
0x1c35   : > { %v3039_v44 = vmul.f32 0.35355338, %v2993_v43 }
0x1c3c   : > { %v5526_v34 = vpop.eup %5525 }
0x1c3d   : > { %v5528_v35 = vpop.eup %5527  ;;  %v3773_v36 = vsel %vm1381_vm9, %v5526_v34, 0.0 }
0x1c3e   : > { %3774 = vadd.xlane.f32.xlu0 %v3773_v36  ;;  %v3770_v37 = vsel %vm1381_vm9, %v5528_v35, 0.0 }
0x1c3f   : > { %3771 = vadd.xlane.f32.xlu1 %v3770_v37 }
0x1c50   : > { %2846 = vperm.xlu1 %5452, %v4841_v38  }
0x1c54   : > { %2861 = vperm.xlu0 %5453, %v4844_v39  }
0x1c72   : > { %3947 = vxpose.xlu0.b32.start.end [1/1] (short) (narrow) %v3039_v44, 16  ;;  %v4900_v44 = vld [vmem:[%s6439_s15 + $0x30] sm:$0xff] }
0x1ccb   : > { %v3775_v45 = vpop.xlane.xlu0 %3774 }
0x1ccc   : > { %5529 = vrcp.f32 %v3775_v45  ;;  %v3772_v48 = vpop.xlane.xlu1 %3771  ;;  %v4901_v45 = vld [vmem:[%s6439_s15 + $0x38] sm:$0xff] }
0x1ccd   : > { %5531 = vrcp.f32 %v3772_v48  ;;  %v5367_v48 = vpack.c.bf16 %v4901_v45, %v4900_v44 }
0x1cd0   : > { %v2847_v49 = vpop.permute.xlu1 %2846 }
0x1cd1   : > { %v3013_v28 = vadd.f32 %v6173_v2, %v2847_v49  ;;  %v4862_v2 = vld [vmem:[%s6435_s11 + $0x30] sm:$0xff] }
0x1cd2   : > { %5263 = vmatprep.subr.mxu1 %v4862_v2 }
0x1cd3   : > { %v2862_v50 = vpop.permute.xlu0 %2861  ;;  %5264 = vmatpush3.msra.mxu1 %v4862_v2 }
0x1cd4   : > { %v3028_v51 = vadd.f32 %v3027_v41, %v2862_v50  ;;  %v4898_v41 = vld [vmem:[%s6439_s15 + $0x20] sm:$0xff] }
0x1cd5   : > { %v5363_v43 = vpack.c.bf16 %v4899_v42, %v4898_v41 }
0x1cd6   : > { %v5530_v15 = vpop.eup %5529  ;;  %5258 = vmatprep.subr.msk.mxu0 %vm1381_vm9, %v3028_v51 }
0x1cd7   : > { %v5532_v52 = vpop.eup %5531  ;;  %5259 = vmatpush3.xpose.msk.msra.mxu0 %vm1381_vm9, %v3028_v51  ;;  %v3779_v58 = vmul.f32 %v5530_v15, %v5526_v34 }
0x1cd8   : > { %5268 = vmatprep.subr.mxu0 %v3013_v28  ;;  %v3778_v53 = vmul.f32 %v5532_v52, %v5528_v35 }
0x1cda   : > { %5260 = vmatprep.mubr.msk.f32.mxu0 %vm1381_vm9, %v3778_v53 }
0x1cdb   : > { %5261 = vmatmul.mubr.msk.f32.vlgmr.msra.gmra.mrb[28].mxu0 %vm1381_vm9, %v3779_v58  ;;  %v4896_v58 = vld [vmem:[%s6437_s13 + $0x1] ss:$0 sm:$0xff] }
0x1cdc   : > { %5269 = vmatpush3.msra.mxu0 %v3013_v28 }
0x1cdd   : > { %5364 = vmatprep.subr.bf16.mxu0 %v5363_v43 }
0x1cf2   : > { %v3963_v54 = vpop.trf.xlu0 }
0x1cf3   : > { %5270 = vmatprep.mubr.msk.f32.mxu0 %vm883_vm3, %v3963_v54 }
0x1cf6   : > { %v3964_v55 = vpop.trf.xlu0 }
0x1cf7   : > { %5271 = vmatmul.mubr.msk.f32.vlgmr.msra.gmra.mrb[30].mxu0 %vm883_vm3, %v3964_v55  ;;  %v4897_v55 = vld [vmem:[%s6438_s14 + $0x1] ss:$0 sm:$0xff] }
0x1cf8   : > { %5366 = vmatpush3.bf16.msra.mxu0 %v5363_v43 }
0x1cf9   : > { %5368 = vmatprep.subr.bf16.mxu0 %v5367_v48 }
0x1cfc   : > { %5370 = vmatpush3.bf16.msra.mxu0 %v5367_v48 }
0x1dae   : > { %v5262_v56 = vpop.f32.mrb[28].mxu0 }
0x1daf   : > { %v3855_v60 = vpop.f32.mrb[29].mxu0 }
0x1db0   : > { %5265 = vmatprep.mubr.msk.f32.mxu1 %vm883_vm3, %v3855_v60 }
0x1db1   : > { %5266 = vmatmul.mubr.msk.f32.vlgmr.msra.gmra.mrb[32].mxu1 %vm883_vm3, %v5262_v56 }
0x1dca   : > { %v5272_v61 = vpop.f32.mrb[30].mxu0 }
0x1dcb   : > { %v4051_v62 = vpop.f32.mrb[31].mxu0  ;;  %v4063_v63 = vsel %vm1381_vm9, %v5272_v61, -inf }
0x1dcc   : > { %4064 = vmax.xlane.f32.xlu0 %v4063_v63  ;;  %v4060_v0 = vsel %vm1381_vm9, %v4051_v62, -inf }
0x1dcd   : > { %4061 = vmax.xlane.f32.xlu1 %v4060_v0  ;;  %v4906_v0 = vld [vmem:[%s6441_s17 + $0x40] sm:$0xff] }
0x1e59   : > { %v4065_v3 = vpop.xlane.xlu0 %4064 }
0x1e5a   : > { %v4067_v4 = vsub.f32 %v5272_v61, %v4065_v3  ;;  %v4062_v5 = vpop.xlane.xlu1 %4061  ;;  %v4907_v3 = vld [vmem:[%s6441_s17 + $0x48] sm:$0xff] }
0x1e5b   : > { %v4066_v47 = vsub.f32 %v4051_v62, %v4062_v5  ;;  %v4908_v5 = vld [vmem:[%s6441_s17 + $0x50] sm:$0xff] }
0x1e5c   : > { %v4070_v6 = vmul.f32 1.442695, %v4067_v4  ;;  %v5371_v4 = vpack.c.bf16 %v4907_v3, %v4906_v0 }
0x1e5d   : > { %v4068_v46 = vmul.f32 1.442695, %v4066_v47  ;;  %v4909_v47 = vld [vmem:[%s6441_s17 + $0x58] sm:$0xff] }
0x1e5e   : > { %5533 = vpow2.f32 %v4070_v6  ;;  %v5375_v6 = vpack.c.bf16 %v4909_v47, %v4908_v5  ;;  %v4918_v5 = vld [vmem:[%s6443_s19] ss:$0 sm:$0xff] }
0x1e5f   : > { %5535 = vpow2.f32 %v4068_v46  ;;  %v4910_v46 = vld [vmem:[%s6441_s17 + $0x60] sm:$0xff] }
0x1e68   : > { %v5534_v7 = vpop.eup %5533 }
0x1e69   : > { %v4075_v8 = vsel %vm1381_vm9, %v5534_v7, 0.0  ;;  %v5536_v59 = vpop.eup %5535 }
0x1e6a   : > { %4076 = vadd.xlane.f32.xlu1 %v4075_v8  ;;  %v4072_v9 = vsel %vm1381_vm9, %v5536_v59, 0.0 }
0x1e6e   : > { %4073 = vadd.xlane.f32.xlu1 %v4072_v9  ;;  %v4913_v9 = vld [vmem:[%s6441_s17 + $0x78] sm:$0xff] }
0x1e7f   : > { %2866 = vperm.xlu1 %5452, %v4845_v10  }
0x1ef7   : > { %v4077_v11 = vpop.xlane.xlu1 %4076 }
0x1ef8   : > { %5537 = vrcp.f32 %v4077_v11  ;;  %v4903_v11 = vld [vmem:[%s6440_s16 + $0x1] ss:$0 sm:$0xff] }
0x1efb   : > { %v4074_v12 = vpop.xlane.xlu1 %4073 }
0x1efc   : > { %5539 = vrcp.f32 %v4074_v12 }
0x1eff   : > { %v2867_v13 = vpop.permute.xlu1 %2866 }
0x1f00   : > { %v3033_v14 = vadd.f32 %v6244_v40, %v2867_v13 }
0x1f02   : > { %5273 = vmatprep.subr.msk.mxu1 %vm1381_vm9, %v3033_v14  ;;  %v5538_v19 = vpop.eup %5537 }
0x1f03   : > { %5274 = vmatpush3.xpose.msk.msra.mxu1 %vm1381_vm9, %v3033_v14  ;;  %v4081_v22 = vmul.f32 %v5538_v19, %v5534_v7  ;;  %v4911_v7 = vld [vmem:[%s6441_s17 + $0x68] sm:$0xff] }
0x1f04   : > { %5278 = vmatprep.subr.mxu1 %v4863_v18  ;;  %v5379_v8 = vpack.c.bf16 %v4911_v7, %v4910_v46 }
0x1f06   : > { %v5540_v20 = vpop.eup %5539 }
0x1f07   : > { %v4080_v21 = vmul.f32 %v5540_v20, %v5536_v59  ;;  %v4912_v59 = vld [vmem:[%s6441_s17 + $0x70] sm:$0xff] }
0x1f08   : > { %v5383_v10 = vpack.c.bf16 %v4913_v9, %v4912_v59 }
0x1f09   : > { %5275 = vmatprep.mubr.msk.f32.mxu1 %vm1381_vm9, %v4080_v21 }
0x1f0a   : > { %5276 = vmatmul.mubr.msk.f32.vlgmr.msra.gmra.mrb[34].mxu1 %vm1381_vm9, %v4081_v22 }
0x1f0b   : > { %5279 = vmatpush3.msra.mxu1 %v4863_v18 }
0x1f0c   : > { %5372 = vmatprep.subr.bf16.mxu1 %v5371_v4 }
0x1fdd   : > { %v5277_v23 = vpop.f32.mrb[34].mxu1 }
0x1fde   : > { %v4157_v24 = vpop.f32.mrb[35].mxu1 }
0x1fdf   : > { %5280 = vmatprep.mubr.msk.f32.mxu1 %vm883_vm3, %v4157_v24 }
0x1fe0   : > { %5281 = vmatmul.mubr.msk.f32.vlgmr.msra.gmra.mrb[32].mxu1 %vm883_vm3, %v5277_v23 }
0x1fe1   : > { %5374 = vmatpush3.bf16.msra.mxu1 %v5371_v4 }
0x1fe2   : > { %5376 = vmatprep.subr.bf16.mxu1 %v5375_v6 }
0x1fe5   : > { %5378 = vmatpush3.bf16.msra.mxu1 %v5375_v6  ;;  %v4919_v6 = vld [vmem:[%s6444_s20] ss:$0 sm:$0xff] }
0x1fe6   : > { %5380 = vmatprep.subr.bf16.mxu1 %v5379_v8 }
0x1fe9   : > { %5382 = vmatpush3.bf16.msra.mxu1 %v5379_v8 }
0x1fea   : > { %5384 = vmatprep.subr.bf16.mxu1 %v5383_v10 }
0x1fed   : > { %5386 = vmatpush3.bf16.msra.mxu1 %v5383_v10 }
0x20b3   : > { %v5282_v27 = vpop.f32.mrb[32].mxu1 }
0x20b4   : > { %v4250_v25 = vadd.f32 %v5282_v27, %v6091_v17  ;;  %v4238_v26 = vpop.f32.mrb[33].mxu1 }
0x20b5   : > { %v4249_v29 = vadd.f32 %v4238_v26, %v6088_v16 }
0x20b6   : > { %v6281_v57 = vadd.f32 %v4893_v1, %v4250_v25 }
0x20b7   : > { %v6283_v30 = vadd.f32 %v4893_v1, %v4249_v29 }
0x20b8   : > { %v4268_v31 = vsel %vm813_vm2, %v6281_v57, 0.0 }
0x20b9   : > { %4269 = vadd.xlane.f32.xlu0 %v4268_v31  ;;  %v4265_v32 = vsel %vm813_vm2, %v6283_v30, 0.0 }
0x20ba   : > { %4266 = vadd.xlane.f32.xlu1 %v4265_v32 }
0x2146   : > { %v4270_v33 = vpop.xlane.xlu0 %4269 }
0x2147   : > { %v4272_v34 = vmul.f32 0.03125, %v4270_v33  ;;  %v4267_v35 = vpop.xlane.xlu1 %4266 }
0x2148   : > { %v4271_v36 = vmul.f32 0.03125, %v4267_v35 }
0x2149   : > { %v4274_v17 = vsub.f32 %v6281_v57, %v4272_v34 }
0x214a   : > { %v4273_v16 = vsub.f32 %v6283_v30, %v4271_v36 }
0x214b   : > { %v4276_v39 = vmul.f32 %v4274_v17, %v4274_v17 }
0x214c   : > { %v4275_v37 = vmul.f32 %v4273_v16, %v4273_v16 }
0x214d   : > { %v4280_v40 = vsel %vm813_vm2, %v4276_v39, 0.0 }
0x214e   : > { %v4277_v38 = vsel %vm813_vm2, %v4275_v37, 0.0 }
0x214f   : > { %4278 = vadd.xlane.f32.xlu0 %v4277_v38 }
0x2153   : > { %4281 = vadd.xlane.f32.xlu0 %v4280_v40 }
0x21dc   : > { %v4279_v49 = vpop.xlane.xlu0 %4278 }
0x21dd   : > { %v4283_v50 = vmul.f32 0.03125, %v4279_v49 }
0x21df   : > { %v4285_v51 = vadd.f32 1e-06, %v4283_v50 }
0x21e0   : > { %v4282_v15 = vpop.xlane.xlu0 %4281 }
0x21e1   : > { %5541 = vrsqrt.f32 %v4285_v51  ;;  %v4284_v28 = vmul.f32 0.03125, %v4282_v15 }
0x21e3   : > { %v4286_v52 = vadd.f32 1e-06, %v4284_v28 }
0x21e5   : > { %5543 = vrsqrt.f32 %v4286_v52 }
0x21eb   : > { %v5542_v53 = vpop.eup %5541 }
0x21ec   : > { %v4289_v54 = vmul.f32 %v5542_v53, %v4273_v16  ;;  %v4915_v16 = vld [vmem:[%s6442_s18 + $0x1] ss:$0 sm:$0xff] }
0x21ee   : > { %v4297_v2 = vmul.f32 %v4896_v58, %v4289_v54 }
0x21ef   : > { %v5544_v56 = vpop.eup %5543 }
0x21f0   : > { %v4290_v60 = vmul.f32 %v5544_v56, %v4274_v17  ;;  %v4305_v61 = vadd.f32 %v4897_v55, %v4297_v2  ;;  %v4566_v2 = vld [vmem:[%s6445_s21 + $0x18] sm:$0xff] }
0x21f2   : > { %v4298_v62 = vmul.f32 %v4896_v58, %v4290_v60  ;;  %5291 = vmatprep.mubr.msk.f32.mxu0 %vm813_vm2, %v4305_v61  ;;  %v4564_v58 = vld [vmem:[%s6445_s21 + $0x8] sm:$0xff] }
0x21f4   : > { %v4306_v63 = vadd.f32 %v4897_v55, %v4298_v62  ;;  %v4565_v55 = vld [vmem:[%s6445_s21 + $0x10] sm:$0xff] }
0x21f5   : > { %v5391_v56 = vpack.c.bf16 %v4566_v2, %v4565_v55 }
0x21f6   : > { %5292 = vmatmul.mubr.msk.f32.vlgmr.msra.gmra.mrb[32].mxu0 %vm813_vm2, %v4306_v63 }
0x22c9   : > { %v5293_v12 = vpop.f32.mrb[32].mxu0 }
0x22ca   : > { %v4398_v13 = vadd.f32 %v5293_v12, %v4903_v11  ;;  %v4392_v14 = vpop.f32.mrb[33].mxu0 }
0x22cb   : > { %v4393_v18 = vadd.f32 %v4903_v11, %v4392_v14  ;;  %v4920_v11 = vld [vmem:[%s6446_s22] ss:$0 sm:$0xff] }
0x22cc   : > { %v4404_v19 = vmul.f32 0.044715, %v4398_v13  ;;  %v4402_v35 = vmul.f32 0.5, %v4398_v13 }
0x22cd   : > { %v4403_v20 = vmul.f32 0.044715, %v4393_v18  ;;  %v4401_v33 = vmul.f32 0.5, %v4393_v18 }
0x22ce   : > { %v4406_v21 = vmul.f32 %v4404_v19, %v4398_v13 }
0x22cf   : > { %v4405_v22 = vmul.f32 %v4403_v20, %v4393_v18 }
0x22d0   : > { %v4408_v23 = vmul.f32 %v4406_v21, %v4398_v13 }
0x22d1   : > { %v4407_v24 = vmul.f32 %v4405_v22, %v4393_v18 }
0x22d2   : > { %v4410_v27 = vadd.f32 %v4408_v23, %v4398_v13 }
0x22d3   : > { %v4409_v1 = vadd.f32 %v4407_v24, %v4393_v18 }
0x22d4   : > { %v4412_v25 = vmul.f32 0.7978846, %v4410_v27 }
0x22d5   : > { %v4411_v26 = vmul.f32 0.7978846, %v4409_v1 }
0x22d6   : > { %5545 = vtanh.f32 %v4412_v25 }
0x22d7   : > { %5547 = vtanh.f32 %v4411_v26 }
0x22e0   : > { %v5546_v29 = vpop.eup %5545 }
0x22e1   : > { %v5548_v31 = vpop.eup %5547  ;;  %v4416_v32 = vadd.f32 1.0, %v5546_v29 }
0x22e2   : > { %v4415_v34 = vadd.f32 1.0, %v5548_v31 }
0x22e3   : > { %v4418_v17 = vmul.f32 %v4416_v32, %v4402_v35 }
0x22e4   : > { %v4417_v36 = vmul.f32 %v4415_v34, %v4401_v33 }
0x22e6   : > { %5310 = vmatprep.mubr.msk.f32.mxu1 %vm2653_vm10, %v4417_v36 }
0x22e7   : > { %5311 = vmatmul.mubr.msk.f32.vlgmr.msra.gmra.mrb[36].mxu1 %vm2653_vm10, %v4418_v17 }
0x23ba   : > { %v5312_v37 = vpop.f32.mrb[36].mxu1 }
0x23bb   : > { %v4508_v38 = vpop.f32.mrb[37].mxu1  ;;  %v4514_v39 = vadd.f32 %v5312_v37, %v4915_v16 }
0x23bc   : > { %v4509_v40 = vadd.f32 %v4915_v16, %v4508_v38 }
0x23bd   : > { %v4518_v42 = vadd.f32 %v4514_v39, %v6281_v57  ;;  %v4563_v57 = vld [vmem:[%s6445_s21] sm:$0xff] }
0x23be   : > { %v4517_v41 = vadd.f32 %v4509_v40, %v6283_v30  ;;  %v5387_v54 = vpack.c.bf16 %v4564_v58, %v4563_v57 }
0x23bf   : > { %v4524_v44 = vsel %vm813_vm2, %v4518_v42, 0.0 }
0x23c0   : > { %v4521_v43 = vsel %vm813_vm2, %v4517_v41, 0.0  ;;  %5388 = vmatprep.subr.bf16.mxu0 %v5387_v54 }
0x23c1   : > { %4522 = vadd.xlane.f32.xlu0 %v4521_v43  ;;  %5390 = vmatpush3.bf16.msra.mxu0 %v5387_v54 }
0x23c2   : > { %5392 = vmatprep.subr.bf16.mxu0 %v5391_v56 }
0x23c5   : > { %4525 = vadd.xlane.f32.xlu0 %v4524_v44  ;;  %5394 = vmatpush3.bf16.msra.mxu0 %v5391_v56 }
0x244e   : > { %v4523_v45 = vpop.xlane.xlu0 %4522 }
0x244f   : > { %v4527_v48 = vmul.f32 0.03125, %v4523_v45 }
0x2451   : > { %v4529_v49 = vsub.f32 %v4517_v41, %v4527_v48 }
0x2452   : > { %v4526_v50 = vpop.xlane.xlu0 %4525 }
0x2453   : > { %v4528_v51 = vmul.f32 0.03125, %v4526_v50  ;;  %v4531_v15 = vmul.f32 %v4529_v49, %v4529_v49 }
0x2455   : > { %v4530_v28 = vsub.f32 %v4518_v42, %v4528_v51  ;;  %v4533_v52 = vsel %vm813_vm2, %v4531_v15, 0.0 }
0x2456   : > { %4534 = vadd.xlane.f32.xlu0 %v4533_v52 }
0x2457   : > { %v4532_v53 = vmul.f32 %v4530_v28, %v4530_v28 }
0x2459   : > { %v4536_v30 = vsel %vm813_vm2, %v4532_v53, 0.0 }
0x245a   : > { %4537 = vadd.xlane.f32.xlu1 %v4536_v30 }
0x24e3   : > { %v4535_v60 = vpop.xlane.xlu0 %4534 }
0x24e4   : > { %v4539_v61 = vmul.f32 0.03125, %v4535_v60 }
0x24e6   : > { %v4541_v62 = vadd.f32 1e-06, %v4539_v61 }
0x24e7   : > { %v4538_v63 = vpop.xlane.xlu1 %4537 }
0x24e8   : > { %5549 = vrsqrt.f32 %v4541_v62  ;;  %v4540_v0 = vmul.f32 0.03125, %v4538_v63 }
0x24ea   : > { %v4542_v3 = vadd.f32 1e-06, %v4540_v0 }
0x24ec   : > { %5551 = vrsqrt.f32 %v4542_v3 }
0x24f2   : > { %v5550_v4 = vpop.eup %5549 }
0x24f3   : > { %v4545_v47 = vmul.f32 %v5550_v4, %v4529_v49 }
0x24f5   : > { %v4553_v46 = vmul.f32 %v4918_v5, %v4545_v47 }
0x24f6   : > { %v5552_v7 = vpop.eup %5551 }
0x24f7   : > { %v4546_v8 = vmul.f32 %v5552_v7, %v4530_v28  ;;  %v4561_v59 = vadd.f32 %v4919_v6, %v4553_v46 }
0x24f9   : > { %v4554_v9 = vmul.f32 %v4918_v5, %v4546_v8  ;;  %5321 = vmatprep.mubr.msk.f32.mxu0 %vm813_vm2, %v4561_v59 }
0x24fb   : > { %v4562_v10 = vadd.f32 %v4919_v6, %v4554_v9 }
0x24fd   : > { %5322 = vmatmul.mubr.msk.f32.vlgmr.msra.gmra.mrb[34].mxu0 %vm813_vm2, %v4562_v10 }
0x25d0   : > { %v5323_v12 = vpop.f32.mrb[34].mxu0 }
0x25d1   : > { %v4652_v13 = vadd.f32 %v5323_v12, %v4920_v11  ;;  %v4646_v14 = vpop.f32.mrb[35].mxu0 }
0x25d2   : > { %v4647_v18 = vadd.f32 %v4920_v11, %v4646_v14 }
0x25d3   : > { %4657 = vst.msk [vmem:[%s716_s6 + $0x8] sm:$0xff] %vm4655_vm11, %v4652_v13 }
0x25d4   : > { %4656 = vst.msk [vmem:[%s716_s6] sm:$0xff] %vm4655_vm11, %v4647_v18 }
0x25d5   : > { %5566 = shalt.err (!%p5563_p3)
}
0x25d6   : > { %s5567_s3 = scalar_lea.hbm %s6381_s29, 256  ;;  %s5571_s24 = scalar_lea.hbm %s6447_s23, 512 }
0x25d7   : > { %p5568_p4 = scmp.ne.s32.totalorder %s6381_s29, %s5567_s3  ;;  %p5572_p9 = scmp.lt.u32.totalorder %s6381_s29, %s6447_s23 }
0x25d8   : > { %p5573_p10 = scmp.lt.u32.totalorder %s5571_s24, %s5567_s3  ;;  %p5575_p12 = scmp.lt.u32.totalorder %s5567_s3, %s6381_s29 }
0x25d9   : > { %p5569_p7 = pnand %p5568_p4, %p5782_p5 }
0x25da   : > { %p5574_p11 = por %p5573_p10, %p5572_p9 }
0x25db   : > { %p5570_p8 = pneg %p5569_p7 }
0x25dc   : > { %p5576_p13 = por %p5575_p12, %p5574_p11 }
0x25de   : > { %p5577_p0 = pnand %p5576_p13, %p5570_p8 }
0x25e0   : > { %5580 = shalt.err (!%p5577_p0)
}
0x25e1   : > { %s5622_s0 = smov 128   ;;  %s5623_s5 = smov 8  }
0x25e2   : > { %5407 = dma.vmem_to_hbm [thread:$0]  (%p5782_p5), %s6376_s1, 256, %s6381_s29, %s6383_s4, %s5622_s0, %s5622_s0, %s5623_s5  }
0x25e3 PF: > { %s6486_s28 = sld [smem:[#allocation7_spill]]  ;;  %s6487_s6 = sld [smem:[#allocation5_spill]] }
0x25e9   : > { %p5413_p1 = scmp.ge.s32.totalorder %s6486_s28, 2  ;;  %s4687_s26 = sand.u32 1, %s6487_s6  }
0x25ea   : > { %s4688_s3 = scalar_lea.sflag [#allocation3], %s4687_s26 }
0x25eb   : > { %p5410_p2 = pnand %p5413_p1, %p5786_p6 }
0x25ed   : > { %5598 = dma.done.wait (!%p5410_p2), %s4688_s3, 256  }
0x25ee   : > { %5600 = vsyncadd (!%p5410_p2), %s4688_s3, 4294967040  ;;  %s6489_s25 = sld [smem:[#allocation8_spill]]  ;;  %s6490_s24 = sld [smem:[#allocation6_spill]] }
0x25ef   : > { %s6491_s8 = sld [smem:[#allocation9_spill]]  ;;  %s6492_s4 = smov %s5607_s30 }
0x25f4   : > { %p33_p3 = scmp.ge.s32.totalorder %s6489_s25, 4   ;;  %s6493_s30 = smov %s6490_s24 }
0x25f5   : > { %s6494_s24 = smov %s6491_s8 }
0x25f6   :  { %35 = sbr.rel (!%p33_p3) target bundleno = 13 (0xd), region = 162 }
0x25fd   :  { %4693 = vsyncpa [#allocation3], 1 }
0x25fe   :  { %4695 = vsyncpa [#allocation3 + $0x1], 1 }

</bundles_post_ra>
